<compile_context>
chip_gen: v5e
topology: v5e:2x2
jax: 0.10.0
libtpu: 0.0.40
codegen_flags: <defaults>
</compile_context>

<pallas_src>
import functools

import numpy as np
import jax
import jax.numpy as jnp
from jax import lax
from jax.experimental import pallas as pl
from jax.experimental.pallas import tpu as pltpu

NUM_HUMANS = 2
OUT_LANES = 128  # lane-dense output slab (one unmasked store per layer)

# lane indices in the per-layer output row
_H_WNLL, _H_WSUM, _O_WNLL, _O_WSUM, _A_WNLL, _A_WSUM = 0, 1, 2, 3, 4, 5
_CARD, _H_L1, _O_L1, _H_GIOU, _O_GIOU = 6, 7, 8, 9, 10


# --------------------------------------------------------------------------
# Fused Pallas kernel: one decoder layer per grid step
# --------------------------------------------------------------------------
def _fused_loss_kernel(hl_ref, ol_ref, al_ref, htc_ref, otc_ref, atc_ref,
                       tlen_ref, boxes_ref, out_ref, *,
                       eos_coef, num_humans, num_classes, num_actions):
    """Weighted CE (3 heads) + cardinality + L1/GIoU sums for one layer."""

    def wce(logits, tgt, no_obj):
        # logits [B, Q, C] f32 (raw, unpadded); tgt [B, Q] int32
        m = jnp.max(logits, axis=-1, keepdims=True)
        lse = jnp.log(jnp.sum(jnp.exp(logits - m), axis=-1, keepdims=True)) + m
        logp = logits - lse
        cls = lax.broadcasted_iota(jnp.int32, logits.shape, 2)
        oh = (cls == tgt[:, :, None]).astype(jnp.float32)        # in-kernel one-hot
        nll = -jnp.sum(oh * logp, axis=-1)                       # [B, Q]
        # empty_weight buffer == ones with eos_coef at the no-object class
        wt = jnp.where(tgt == no_obj, eos_coef, 1.0)             # [B, Q]
        return jnp.sum(wt * nll), jnp.sum(wt)

    hl = hl_ref[0]                                               # [B, Q, Ch]
    ol = ol_ref[0]                                               # [B, Q, Co]
    al = al_ref[0]                                               # [B, Q, Ca]

    h_wnll, h_wsum = wce(hl, htc_ref[0], num_humans)
    o_wnll, o_wsum = wce(ol, otc_ref[0], num_classes)
    a_wnll, a_wsum = wce(al, atc_ref[0], num_actions)

    # Cardinality, fused on the already-resident action logits.
    # torch.argmax tie-break (first index) => a tie with the no-object class
    # still counts as "not no-object", hence >=.
    notno = jnp.max(al[..., :num_actions], axis=-1) >= al[..., num_actions]
    card = jnp.sum(notno.astype(jnp.float32), axis=-1, keepdims=True)    # [B, 1]
    card_sum = jnp.sum(jnp.abs(card - tlen_ref[...]))

    # Boxes: [4 sets, 4 coords, Mp]; pad columns hold identical dummy boxes
    # for src and tgt, so they contribute exactly 0 to L1 and to 1-GIoU.
    b = boxes_ref[0]
    hsrc, htgt, osrc, otgt = b[0], b[1], b[2], b[3]              # each [4, Mp]

    def xyxy(bb):
        cx, cy, w, h = bb[0:1, :], bb[1:2, :], bb[2:3, :], bb[3:4, :]
        return cx - 0.5 * w, cy - 0.5 * h, cx + 0.5 * w, cy + 0.5 * h

    def l1_sum(s, t):
        return jnp.sum(jnp.abs(s - t))

    def giou_loss_sum(s, t):
        ax0, ay0, ax1, ay1 = xyxy(s)
        bx0, by0, bx1, by1 = xyxy(t)
        area_a = (ax1 - ax0) * (ay1 - ay0)
        area_b = (bx1 - bx0) * (by1 - by0)
        ix0 = jnp.maximum(ax0, bx0); iy0 = jnp.maximum(ay0, by0)
        ix1 = jnp.minimum(ax1, bx1); iy1 = jnp.minimum(ay1, by1)
        inter = jnp.maximum(ix1 - ix0, 0.0) * jnp.maximum(iy1 - iy0, 0.0)
        union = area_a + area_b - inter
        iou = inter / union
        ex0 = jnp.minimum(ax0, bx0); ey0 = jnp.minimum(ay0, by0)
        ex1 = jnp.maximum(ax1, bx1); ey1 = jnp.maximum(ay1, by1)
        earea = (ex1 - ex0) * (ey1 - ey0)
        giou = iou - (earea - union) / earea
        return jnp.sum(1.0 - giou)

    vals = (h_wnll, h_wsum, o_wnll, o_wsum, a_wnll, a_wsum, card_sum,
            l1_sum(hsrc, htgt), l1_sum(osrc, otgt),
            giou_loss_sum(hsrc, htgt), giou_loss_sum(osrc, otgt))

    lane = lax.broadcasted_iota(jnp.int32, (1, 1, OUT_LANES), 2)
    row = jnp.zeros((1, 1, OUT_LANES), jnp.float32)
    for i, v in enumerate(vals):
        row = jnp.where(lane == i, v, row)
    out_ref[...] = row                                           # single dense store


# --------------------------------------------------------------------------
# Kernel wrapper (single pallas_call for all layers)
# --------------------------------------------------------------------------
@functools.partial(jax.jit,
                   static_argnames=('eos_coef', 'num_humans',
                                    'num_classes', 'num_actions'))
def _fused_loss_sums(h_logits, o_logits, a_logits, h_tc, o_tc, a_tc, tlen, boxes,
                     *, eos_coef, num_humans, num_classes, num_actions):
    L, B, Q, Ch = h_logits.shape
    Co = o_logits.shape[-1]
    Ca = a_logits.shape[-1]
    Mp = boxes.shape[-1]
    kernel = functools.partial(
        _fused_loss_kernel, eos_coef=eos_coef, num_humans=num_humans,
        num_classes=num_classes, num_actions=num_actions)
    out = pl.pallas_call(
        kernel,
        out_shape=jax.ShapeDtypeStruct((L, 1, OUT_LANES), jnp.float32),
        grid=(L,),
        in_specs=[
            pl.BlockSpec((1, B, Q, Ch), lambda l: (l, 0, 0, 0)),
            pl.BlockSpec((1, B, Q, Co), lambda l: (l, 0, 0, 0)),
            pl.BlockSpec((1, B, Q, Ca), lambda l: (l, 0, 0, 0)),
            pl.BlockSpec((1, B, Q), lambda l: (l, 0, 0)),
            pl.BlockSpec((1, B, Q), lambda l: (l, 0, 0)),
            pl.BlockSpec((1, B, Q), lambda l: (l, 0, 0)),
            pl.BlockSpec((B, 1), lambda l: (0, 0)),              # shared targets len
            pl.BlockSpec((1, 4, 4, Mp), lambda l: (l, 0, 0, 0)),
        ],
        out_specs=pl.BlockSpec((1, 1, OUT_LANES), lambda l: (l, 0, 0)),
        compiler_params=pltpu.CompilerParams(
            dimension_semantics=("parallel",)),   # layers shard across TCs on v7x
    )(h_logits, o_logits, a_logits, h_tc, o_tc, a_tc, tlen, boxes)
    return out[:, 0, :]                                           # [L, 128]


# --------------------------------------------------------------------------
# SetCriterion (JAX / Pallas)
# --------------------------------------------------------------------------
def simple_matcher(outputs, targets):
    # TODO(synk): Hungarian assignment (scipy.optimize.linear_sum_assignment) has
    # no clean Pallas equivalent; use a fixed deterministic matching (tgt j -> query j).
    return [(np.arange(len(t['human_labels'])), np.arange(len(t['human_labels'])))
            for t in targets]


class SetCriterionPallas:
    def __init__(self, num_classes, num_actions, matcher, weight_dict, eos_coef, losses):
        self.num_classes = num_classes
        self.num_actions = num_actions
        self.matcher = matcher
        self.weight_dict = weight_dict
        self.eos_coef = float(eos_coef)
        self.losses = losses
        # registered-buffer equivalents (ones with eos_coef at the no-object slot);
        # the fused kernel reproduces them in-kernel from eos_coef directly.
        self.human_empty_weight = jnp.ones(NUM_HUMANS + 1, jnp.float32).at[-1].set(eos_coef)
        self.object_empty_weight = jnp.ones(num_classes + 1, jnp.float32).at[-1].set(eos_coef)
        self.action_empty_weight = jnp.ones(num_actions + 1, jnp.float32).at[-1].set(eos_coef)

    # ---- helpers ----------------------------------------------------------
    @staticmethod
    def _get_src_permutation_idx(indices):
        batch_idx = np.concatenate(
            [np.full_like(np.asarray(src), i) for i, (src, _) in enumerate(indices)])
        src_idx = np.concatenate([np.asarray(src) for src, _ in indices])
        return batch_idx.astype(np.int32), src_idx.astype(np.int32)

    def _layer_inputs(self, out_l, targets, indices):
        """Target-class maps [B,Q] int32 and a packed matched-box slab [4,4,Mp]."""
        B, Q, _ = out_l['human_pred_logits'].shape
        batch_idx, src_idx = self._get_src_permutation_idx(indices)

        def classes(key, fill):
            tco = jnp.concatenate(
                [t[key][np.asarray(J)] for t, (_, J) in zip(targets, indices)])
            return (jnp.full((B, Q), fill, jnp.int32)
                    .at[batch_idx, src_idx].set(tco.astype(jnp.int32)))

        h_tc = classes('human_labels', NUM_HUMANS)
        o_tc = classes('object_labels', self.num_classes)
        a_tc = classes('action_labels', self.num_actions)

        h_src = out_l['human_pred_boxes'][batch_idx, src_idx]
        o_src = out_l['object_pred_boxes'][batch_idx, src_idx]
        h_tgt = jnp.concatenate(
            [t['human_boxes'][np.asarray(J)] for t, (_, J) in zip(targets, indices)], axis=0)
        o_tgt = jnp.concatenate(
            [t['object_boxes'][np.asarray(J)] for t, (_, J) in zip(targets, indices)], axis=0)

        M = int(h_src.shape[0])
        Mp = max(8, int(np.ceil(max(M, 1) / 8) * 8))
        bx = jnp.stack([h_src, h_tgt, o_src, o_tgt], axis=0).astype(jnp.float32)  # [4, M, 4]
        bx = jnp.transpose(bx, (0, 2, 1))                                          # [4, 4, M]
        pad = jnp.full((4, 4, Mp - M), 0.5, jnp.float32)   # identical src/tgt dummy -> 0 loss
        boxes = jnp.concatenate([bx, pad], axis=-1)                                 # [4, 4, Mp]
        return h_tc, o_tc, a_tc, boxes

    def _losses_from_row(self, row, num_boxes, batch_size, log, class_error=None):
        d = {}
        if 'labels' in self.losses:
            h_ce = row[_H_WNLL] / row[_H_WSUM]
            o_ce = row[_O_WNLL] / row[_O_WSUM]
            a_ce = row[_A_WNLL] / row[_A_WSUM]
            d['loss_ce'] = h_ce + o_ce + 2.0 * a_ce
            d['human_loss_ce'] = h_ce
            d['object_loss_ce'] = o_ce
            d['action_loss_ce'] = a_ce
            if log:
                d['class_error'] = class_error
        if 'cardinality' in self.losses:
            d['cardinality_error'] = row[_CARD] / batch_size
        if 'boxes' in self.losses:
            hb = row[_H_L1] / num_boxes
            ob = row[_O_L1] / num_boxes
            d['human_loss_bbox'] = hb
            d['object_loss_bbox'] = ob
            d['loss_bbox'] = hb + ob
            hg = row[_H_GIOU] / num_boxes
            og = row[_O_GIOU] / num_boxes
            d['human_loss_giou'] = hg
            d['object_loss_giou'] = og
            d['loss_giou'] = hg + og
        return d

    # ---- forward ----------------------------------------------------------
    def __call__(self, outputs, targets):
        outputs_without_aux = {k: v for k, v in outputs.items() if k != 'aux_outputs'}
        aux_list = list(outputs.get('aux_outputs', []))
        layer_outputs = [outputs_without_aux] + aux_list
        layer_indices = [self.matcher(o, targets) for o in layer_outputs]

        num_boxes = float(sum(len(t['human_labels']) for t in targets))
        num_boxes = max(num_boxes, 1.0)   # single host: no dist all_reduce / world size

        B, Q, _ = outputs_without_aux['human_pred_logits'].shape
        tlen = jnp.asarray([[len(t['action_labels'])] for t in targets], jnp.float32)

        h_tcs, o_tcs, a_tcs, boxes_l = [], [], [], []
        for out_l, ind_l in zip(layer_outputs, layer_indices):
            h_tc, o_tc, a_tc, boxes = self._layer_inputs(out_l, targets, ind_l)
            h_tcs.append(h_tc); o_tcs.append(o_tc); a_tcs.append(a_tc)
            boxes_l.append(boxes)

        # Single fused, layer-batched pallas_call for every loss term.
        sums = _fused_loss_sums(
            jnp.stack([o['human_pred_logits'] for o in layer_outputs]).astype(jnp.float32),
            jnp.stack([o['object_pred_logits'] for o in layer_outputs]).astype(jnp.float32),
            jnp.stack([o['action_pred_logits'] for o in layer_outputs]).astype(jnp.float32),
            jnp.stack(h_tcs), jnp.stack(o_tcs), jnp.stack(a_tcs),
            tlen, jnp.stack(boxes_l),
            eos_coef=self.eos_coef, num_humans=NUM_HUMANS,
            num_classes=self.num_classes, num_actions=self.num_actions)

        # class_error (log-only, main layer): tiny gather + argmax, kept in plain JAX.
        class_error = None
        if 'labels' in self.losses:
            batch_idx, src_idx = self._get_src_permutation_idx(layer_indices[0])
            a_tco = jnp.concatenate(
                [t['action_labels'][np.asarray(J)]
                 for t, (_, J) in zip(targets, layer_indices[0])])
            matched = outputs_without_aux['action_pred_logits'][batch_idx, src_idx]
            acc = jnp.mean((jnp.argmax(matched, axis=-1) == a_tco)
                           .astype(jnp.float32)) * 100.0
            class_error = 100.0 - acc

        losses = self._losses_from_row(sums[0], num_boxes, float(B), log=True,
                                       class_error=class_error)
        for i in range(len(aux_list)):
            l_dict = self._losses_from_row(sums[i + 1], num_boxes, float(B), log=False)
            losses.update({k + f'_{i}': v for k, v in l_dict.items()})
        return losses


# --------------------------------------------------------------------------
if __name__ == "__main__":
    key = jax.random.PRNGKey(0)
    B, Q = 2, 8
    num_classes, num_actions = 4, 6
    num_aux = 2
    keys = jax.random.split(key, 3 + num_aux)

    def make_outputs(k):
        ks = jax.random.split(k, 5)
        return {
            'human_pred_logits': jax.random.normal(ks[0], (B, Q, NUM_HUMANS + 1), jnp.float32),
            'object_pred_logits': jax.random.normal(ks[1], (B, Q, num_classes + 1), jnp.float32),
            'action_pred_logits': jax.random.normal(ks[2], (B, Q, num_actions + 1), jnp.float32),
            'human_pred_boxes': jax.nn.sigmoid(jax.random.normal(ks[3], (B, Q, 4), jnp.float32)),
            'object_pred_boxes': jax.nn.sigmoid(jax.random.normal(ks[4], (B, Q, 4), jnp.float32)),
        }

    outputs = make_outputs(keys[0])
    outputs['aux_outputs'] = [make_outputs(keys[1 + i]) for i in range(num_aux)]

    n_per_batch = [3, 2]
    targets = []
    for b, n in enumerate(n_per_batch):
        kk = jax.random.split(keys[1 + num_aux + b], 5)
        targets.append({
            'human_labels': jax.random.randint(kk[0], (n,), 0, NUM_HUMANS),
            'object_labels': jax.random.randint(kk[1], (n,), 0, num_classes),
            'action_labels': jax.random.randint(kk[2], (n,), 0, num_actions),
            'human_boxes': jax.nn.sigmoid(jax.random.normal(kk[3], (n, 4), jnp.float32)),
            'object_boxes': jax.nn.sigmoid(jax.random.normal(kk[4], (n, 4), jnp.float32)),
        })

    criterion = SetCriterionPallas(
        num_classes, num_actions, simple_matcher,
        weight_dict={'loss_ce': 1.0, 'loss_bbox': 5.0, 'loss_giou': 2.0},
        eos_coef=0.1, losses=['labels', 'cardinality', 'boxes'])

    losses = criterion(outputs, targets)
    losses = jax.block_until_ready(losses)
    assert all(np.isfinite(np.asarray(v)).all() for v in losses.values())
    print("KERNEL_OK")
</pallas_src>

<mosaic_0001>
module attributes {stable_mosaic.version = 11 : i64} {
  func.func @_fused_loss_kernel(%arg0: i32, %arg1: memref<1x2x8x3xf32, #tpu.memory_space<vmem>>, %arg2: memref<1x2x8x5xf32, #tpu.memory_space<vmem>>, %arg3: memref<1x2x8x7xf32, #tpu.memory_space<vmem>>, %arg4: memref<1x2x8xi32, #tpu.memory_space<vmem>>, %arg5: memref<1x2x8xi32, #tpu.memory_space<vmem>>, %arg6: memref<1x2x8xi32, #tpu.memory_space<vmem>>, %arg7: memref<2x1xf32, #tpu.memory_space<vmem>>, %arg8: memref<1x4x4x8xf32, #tpu.memory_space<vmem>>, %arg9: memref<1x1x128xf32, #tpu.memory_space<vmem>>) attributes {dimension_semantics = [#tpu.dimension_semantics<parallel>], iteration_bounds = array<i64: 3>, scalar_prefetch = 0 : i64, scratch_operands = 0 : i64, tpu.core_type = #tpu.core_type<tc>, window_params = [{transform_indices = @transform_0, window_bounds = array<i64: 1, 2, 8, 3>}, {transform_indices = @transform_1, window_bounds = array<i64: 1, 2, 8, 5>}, {transform_indices = @transform_2, window_bounds = array<i64: 1, 2, 8, 7>}, {transform_indices = @transform_3, window_bounds = array<i64: 1, 2, 8>}, {transform_indices = @transform_4, window_bounds = array<i64: 1, 2, 8>}, {transform_indices = @transform_5, window_bounds = array<i64: 1, 2, 8>}, {pipeline_mode = #tpu.pipeline_mode<synchronous>, transform_indices = @transform_6, window_bounds = array<i64: 2, 1>}, {transform_indices = @transform_7, window_bounds = array<i64: 1, 4, 4, 8>}, {transform_indices = @transform_8, window_bounds = array<i64: 1, 1, 128>}]} {
    %c0 = arith.constant 0 : index
    %c0_0 = arith.constant 0 : index
    %c0_1 = arith.constant 0 : index
    %c0_2 = arith.constant 0 : index
    %0 = vector.load %arg1[%c0, %c0_0, %c0_1, %c0_2] : memref<1x2x8x3xf32, #tpu.memory_space<vmem>>, vector<1x2x8x3xf32>
    %1 = vector.shape_cast %0 : vector<1x2x8x3xf32> to vector<2x8x3xf32>
    %c0_3 = arith.constant 0 : index
    %c0_4 = arith.constant 0 : index
    %c0_5 = arith.constant 0 : index
    %c0_6 = arith.constant 0 : index
    %2 = vector.load %arg2[%c0_3, %c0_4, %c0_5, %c0_6] : memref<1x2x8x5xf32, #tpu.memory_space<vmem>>, vector<1x2x8x5xf32>
    %3 = vector.shape_cast %2 : vector<1x2x8x5xf32> to vector<2x8x5xf32>
    %c0_7 = arith.constant 0 : index
    %c0_8 = arith.constant 0 : index
    %c0_9 = arith.constant 0 : index
    %c0_10 = arith.constant 0 : index
    %4 = vector.load %arg3[%c0_7, %c0_8, %c0_9, %c0_10] : memref<1x2x8x7xf32, #tpu.memory_space<vmem>>, vector<1x2x8x7xf32>
    %5 = vector.shape_cast %4 : vector<1x2x8x7xf32> to vector<2x8x7xf32>
    %c0_11 = arith.constant 0 : index
    %c0_12 = arith.constant 0 : index
    %c0_13 = arith.constant 0 : index
    %6 = vector.load %arg4[%c0_11, %c0_12, %c0_13] : memref<1x2x8xi32, #tpu.memory_space<vmem>>, vector<1x2x8xi32>
    %7 = vector.shape_cast %6 : vector<1x2x8xi32> to vector<2x8xi32>
    %cst = arith.constant dense<0xFF800000> : vector<2x8xf32>
    %8 = vector.multi_reduction <maximumf>, %1, %cst [2] : vector<2x8x3xf32> to vector<2x8xf32>
    %9 = vector.shape_cast %8 : vector<2x8xf32> to vector<2x8x1xf32>
    %10 = vector.broadcast %9 : vector<2x8x1xf32> to vector<2x8x3xf32>
    %11 = arith.subf %1, %10 : vector<2x8x3xf32>
    %12 = math.exp %11 : vector<2x8x3xf32>
    %cst_14 = arith.constant dense<0.000000e+00> : vector<2x8xf32>
    %13 = vector.multi_reduction <add>, %12, %cst_14 [2] : vector<2x8x3xf32> to vector<2x8xf32>
    %14 = vector.shape_cast %13 : vector<2x8xf32> to vector<2x8x1xf32>
    %15 = math.log %14 : vector<2x8x1xf32>
    %16 = arith.addf %15, %9 : vector<2x8x1xf32>
    %17 = vector.broadcast %16 : vector<2x8x1xf32> to vector<2x8x3xf32>
    %18 = arith.subf %1, %17 : vector<2x8x3xf32>
    %19 = tpu.iota {dimensions = array<i32: 2>} : vector<2x8x3xi32>
    %20 = vector.shape_cast %7 : vector<2x8xi32> to vector<2x8x1xi32>
    %21 = vector.broadcast %20 : vector<2x8x1xi32> to vector<2x8x3xi32>
    %22 = arith.cmpi eq, %19, %21 : vector<2x8x3xi32>
    %23 = arith.extui %22 : vector<2x8x3xi1> to vector<2x8x3xi32>
    %24 = arith.sitofp %23 : vector<2x8x3xi32> to vector<2x8x3xf32>
    %25 = arith.mulf %24, %18 : vector<2x8x3xf32>
    %cst_15 = arith.constant dense<0.000000e+00> : vector<2x8xf32>
    %26 = vector.multi_reduction <add>, %25, %cst_15 [2] : vector<2x8x3xf32> to vector<2x8xf32>
    %cst_16 = arith.constant 0.000000e+00 : f32
    %27 = vector.broadcast %cst_16 : f32 to vector<2x8xf32>
    %28 = arith.subf %27, %26 : vector<2x8xf32>
    %c2_i32 = arith.constant 2 : i32
    %29 = vector.broadcast %c2_i32 : i32 to vector<2x8xi32>
    %30 = arith.cmpi eq, %7, %29 : vector<2x8xi32>
    %cst_17 = arith.constant 1.000000e-01 : f32
    %cst_18 = arith.constant 1.000000e+00 : f32
    %31 = vector.broadcast %cst_17 : f32 to vector<2x8xf32>
    %32 = vector.broadcast %cst_18 : f32 to vector<2x8xf32>
    %33 = arith.select %30, %31, %32 : vector<2x8xi1>, vector<2x8xf32>
    %34 = arith.mulf %33, %28 : vector<2x8xf32>
    %35 = vector.shape_cast %34 : vector<2x8xf32> to vector<1x2x8xf32>
    %cst_19 = arith.constant dense<0.000000e+00> : vector<1xf32>
    %36 = vector.multi_reduction <add>, %35, %cst_19 [1, 2] : vector<1x2x8xf32> to vector<1xf32>
    %37 = vector.shape_cast %36 : vector<1xf32> to vector<1x1x1xf32>
    %38 = vector.extract %37[0, 0, 0] : f32 from vector<1x1x1xf32>
    %39 = vector.shape_cast %33 : vector<2x8xf32> to vector<1x2x8xf32>
    %cst_20 = arith.constant dense<0.000000e+00> : vector<1xf32>
    %40 = vector.multi_reduction <add>, %39, %cst_20 [1, 2] : vector<1x2x8xf32> to vector<1xf32>
    %41 = vector.shape_cast %40 : vector<1xf32> to vector<1x1x1xf32>
    %42 = vector.extract %41[0, 0, 0] : f32 from vector<1x1x1xf32>
    %c0_21 = arith.constant 0 : index
    %c0_22 = arith.constant 0 : index
    %c0_23 = arith.constant 0 : index
    %43 = vector.load %arg5[%c0_21, %c0_22, %c0_23] : memref<1x2x8xi32, #tpu.memory_space<vmem>>, vector<1x2x8xi32>
    %44 = vector.shape_cast %43 : vector<1x2x8xi32> to vector<2x8xi32>
    %cst_24 = arith.constant dense<0xFF800000> : vector<2x8xf32>
    %45 = vector.multi_reduction <maximumf>, %3, %cst_24 [2] : vector<2x8x5xf32> to vector<2x8xf32>
    %46 = vector.shape_cast %45 : vector<2x8xf32> to vector<2x8x1xf32>
    %47 = vector.broadcast %46 : vector<2x8x1xf32> to vector<2x8x5xf32>
    %48 = arith.subf %3, %47 : vector<2x8x5xf32>
    %49 = math.exp %48 : vector<2x8x5xf32>
    %cst_25 = arith.constant dense<0.000000e+00> : vector<2x8xf32>
    %50 = vector.multi_reduction <add>, %49, %cst_25 [2] : vector<2x8x5xf32> to vector<2x8xf32>
    %51 = vector.shape_cast %50 : vector<2x8xf32> to vector<2x8x1xf32>
    %52 = math.log %51 : vector<2x8x1xf32>
    %53 = arith.addf %52, %46 : vector<2x8x1xf32>
    %54 = vector.broadcast %53 : vector<2x8x1xf32> to vector<2x8x5xf32>
    %55 = arith.subf %3, %54 : vector<2x8x5xf32>
    %56 = tpu.iota {dimensions = array<i32: 2>} : vector<2x8x5xi32>
    %57 = vector.shape_cast %44 : vector<2x8xi32> to vector<2x8x1xi32>
    %58 = vector.broadcast %57 : vector<2x8x1xi32> to vector<2x8x5xi32>
    %59 = arith.cmpi eq, %56, %58 : vector<2x8x5xi32>
    %60 = arith.extui %59 : vector<2x8x5xi1> to vector<2x8x5xi32>
    %61 = arith.sitofp %60 : vector<2x8x5xi32> to vector<2x8x5xf32>
    %62 = arith.mulf %61, %55 : vector<2x8x5xf32>
    %cst_26 = arith.constant dense<0.000000e+00> : vector<2x8xf32>
    %63 = vector.multi_reduction <add>, %62, %cst_26 [2] : vector<2x8x5xf32> to vector<2x8xf32>
    %cst_27 = arith.constant 0.000000e+00 : f32
    %64 = vector.broadcast %cst_27 : f32 to vector<2x8xf32>
    %65 = arith.subf %64, %63 : vector<2x8xf32>
    %c4_i32 = arith.constant 4 : i32
    %66 = vector.broadcast %c4_i32 : i32 to vector<2x8xi32>
    %67 = arith.cmpi eq, %44, %66 : vector<2x8xi32>
    %cst_28 = arith.constant 1.000000e-01 : f32
    %cst_29 = arith.constant 1.000000e+00 : f32
    %68 = vector.broadcast %cst_28 : f32 to vector<2x8xf32>
    %69 = vector.broadcast %cst_29 : f32 to vector<2x8xf32>
    %70 = arith.select %67, %68, %69 : vector<2x8xi1>, vector<2x8xf32>
    %71 = arith.mulf %70, %65 : vector<2x8xf32>
    %72 = vector.shape_cast %71 : vector<2x8xf32> to vector<1x2x8xf32>
    %cst_30 = arith.constant dense<0.000000e+00> : vector<1xf32>
    %73 = vector.multi_reduction <add>, %72, %cst_30 [1, 2] : vector<1x2x8xf32> to vector<1xf32>
    %74 = vector.shape_cast %73 : vector<1xf32> to vector<1x1x1xf32>
    %75 = vector.extract %74[0, 0, 0] : f32 from vector<1x1x1xf32>
    %76 = vector.shape_cast %70 : vector<2x8xf32> to vector<1x2x8xf32>
    %cst_31 = arith.constant dense<0.000000e+00> : vector<1xf32>
    %77 = vector.multi_reduction <add>, %76, %cst_31 [1, 2] : vector<1x2x8xf32> to vector<1xf32>
    %78 = vector.shape_cast %77 : vector<1xf32> to vector<1x1x1xf32>
    %79 = vector.extract %78[0, 0, 0] : f32 from vector<1x1x1xf32>
    %c0_32 = arith.constant 0 : index
    %c0_33 = arith.constant 0 : index
    %c0_34 = arith.constant 0 : index
    %80 = vector.load %arg6[%c0_32, %c0_33, %c0_34] : memref<1x2x8xi32, #tpu.memory_space<vmem>>, vector<1x2x8xi32>
    %81 = vector.shape_cast %80 : vector<1x2x8xi32> to vector<2x8xi32>
    %cst_35 = arith.constant dense<0xFF800000> : vector<2x8xf32>
    %82 = vector.multi_reduction <maximumf>, %5, %cst_35 [2] : vector<2x8x7xf32> to vector<2x8xf32>
    %83 = vector.shape_cast %82 : vector<2x8xf32> to vector<2x8x1xf32>
    %84 = vector.broadcast %83 : vector<2x8x1xf32> to vector<2x8x7xf32>
    %85 = arith.subf %5, %84 : vector<2x8x7xf32>
    %86 = math.exp %85 : vector<2x8x7xf32>
    %cst_36 = arith.constant dense<0.000000e+00> : vector<2x8xf32>
    %87 = vector.multi_reduction <add>, %86, %cst_36 [2] : vector<2x8x7xf32> to vector<2x8xf32>
    %88 = vector.shape_cast %87 : vector<2x8xf32> to vector<2x8x1xf32>
    %89 = math.log %88 : vector<2x8x1xf32>
    %90 = arith.addf %89, %83 : vector<2x8x1xf32>
    %91 = vector.broadcast %90 : vector<2x8x1xf32> to vector<2x8x7xf32>
    %92 = arith.subf %5, %91 : vector<2x8x7xf32>
    %93 = tpu.iota {dimensions = array<i32: 2>} : vector<2x8x7xi32>
    %94 = vector.shape_cast %81 : vector<2x8xi32> to vector<2x8x1xi32>
    %95 = vector.broadcast %94 : vector<2x8x1xi32> to vector<2x8x7xi32>
    %96 = arith.cmpi eq, %93, %95 : vector<2x8x7xi32>
    %97 = arith.extui %96 : vector<2x8x7xi1> to vector<2x8x7xi32>
    %98 = arith.sitofp %97 : vector<2x8x7xi32> to vector<2x8x7xf32>
    %99 = arith.mulf %98, %92 : vector<2x8x7xf32>
    %cst_37 = arith.constant dense<0.000000e+00> : vector<2x8xf32>
    %100 = vector.multi_reduction <add>, %99, %cst_37 [2] : vector<2x8x7xf32> to vector<2x8xf32>
    %cst_38 = arith.constant 0.000000e+00 : f32
    %101 = vector.broadcast %cst_38 : f32 to vector<2x8xf32>
    %102 = arith.subf %101, %100 : vector<2x8xf32>
    %c6_i32 = arith.constant 6 : i32
    %103 = vector.broadcast %c6_i32 : i32 to vector<2x8xi32>
    %104 = arith.cmpi eq, %81, %103 : vector<2x8xi32>
    %cst_39 = arith.constant 1.000000e-01 : f32
    %cst_40 = arith.constant 1.000000e+00 : f32
    %105 = vector.broadcast %cst_39 : f32 to vector<2x8xf32>
    %106 = vector.broadcast %cst_40 : f32 to vector<2x8xf32>
    %107 = arith.select %104, %105, %106 : vector<2x8xi1>, vector<2x8xf32>
    %108 = arith.mulf %107, %102 : vector<2x8xf32>
    %109 = vector.shape_cast %108 : vector<2x8xf32> to vector<1x2x8xf32>
    %cst_41 = arith.constant dense<0.000000e+00> : vector<1xf32>
    %110 = vector.multi_reduction <add>, %109, %cst_41 [1, 2] : vector<1x2x8xf32> to vector<1xf32>
    %111 = vector.shape_cast %110 : vector<1xf32> to vector<1x1x1xf32>
    %112 = vector.extract %111[0, 0, 0] : f32 from vector<1x1x1xf32>
    %113 = vector.shape_cast %107 : vector<2x8xf32> to vector<1x2x8xf32>
    %cst_42 = arith.constant dense<0.000000e+00> : vector<1xf32>
    %114 = vector.multi_reduction <add>, %113, %cst_42 [1, 2] : vector<1x2x8xf32> to vector<1xf32>
    %115 = vector.shape_cast %114 : vector<1xf32> to vector<1x1x1xf32>
    %116 = vector.extract %115[0, 0, 0] : f32 from vector<1x1x1xf32>
    %117 = vector.extract_strided_slice %5 {offsets = [0, 0, 0], sizes = [2, 8, 6], strides = [1, 1, 1]} : vector<2x8x7xf32> to vector<2x8x6xf32>
    %cst_43 = arith.constant dense<0xFF800000> : vector<2x8xf32>
    %118 = vector.multi_reduction <maximumf>, %117, %cst_43 [2] : vector<2x8x6xf32> to vector<2x8xf32>
    %119 = vector.extract_strided_slice %5 {offsets = [0, 0, 6], sizes = [2, 8, 1], strides = [1, 1, 1]} : vector<2x8x7xf32> to vector<2x8x1xf32>
    %120 = vector.shape_cast %119 : vector<2x8x1xf32> to vector<2x8xf32>
    %121 = arith.cmpf oge, %118, %120 : vector<2x8xf32>
    %122 = arith.extui %121 : vector<2x8xi1> to vector<2x8xi32>
    %123 = arith.sitofp %122 : vector<2x8xi32> to vector<2x8xf32>
    %cst_44 = arith.constant dense<0.000000e+00> : vector<2xf32>
    %124 = vector.multi_reduction <add>, %123, %cst_44 [1] : vector<2x8xf32> to vector<2xf32>
    %125 = vector.shape_cast %124 : vector<2xf32> to vector<2x1xf32>
    %c0_45 = arith.constant 0 : index
    %c0_46 = arith.constant 0 : index
    %126 = vector.load %arg7[%c0_45, %c0_46] : memref<2x1xf32, #tpu.memory_space<vmem>>, vector<2x1xf32>
    %127 = arith.subf %125, %126 : vector<2x1xf32>
    %128 = math.absf %127 : vector<2x1xf32>
    %129 = vector.shape_cast %128 : vector<2x1xf32> to vector<1x2x1xf32>
    %cst_47 = arith.constant dense<0.000000e+00> : vector<1xf32>
    %130 = vector.multi_reduction <add>, %129, %cst_47 [1, 2] : vector<1x2x1xf32> to vector<1xf32>
    %131 = vector.shape_cast %130 : vector<1xf32> to vector<1x1x1xf32>
    %132 = vector.extract %131[0, 0, 0] : f32 from vector<1x1x1xf32>
    %c0_48 = arith.constant 0 : index
    %c0_49 = arith.constant 0 : index
    %c0_50 = arith.constant 0 : index
    %c0_51 = arith.constant 0 : index
    %133 = vector.load %arg8[%c0_48, %c0_49, %c0_50, %c0_51] : memref<1x4x4x8xf32, #tpu.memory_space<vmem>>, vector<1x4x4x8xf32>
    %134 = vector.shape_cast %133 : vector<1x4x4x8xf32> to vector<4x4x8xf32>
    %135 = vector.extract_strided_slice %134 {offsets = [0, 0, 0], sizes = [1, 4, 8], strides = [1, 1, 1]} : vector<4x4x8xf32> to vector<1x4x8xf32>
    %136 = vector.shape_cast %135 : vector<1x4x8xf32> to vector<4x8xf32>
    %137 = vector.extract_strided_slice %134 {offsets = [1, 0, 0], sizes = [1, 4, 8], strides = [1, 1, 1]} : vector<4x4x8xf32> to vector<1x4x8xf32>
    %138 = vector.shape_cast %137 : vector<1x4x8xf32> to vector<4x8xf32>
    %139 = vector.extract_strided_slice %134 {offsets = [2, 0, 0], sizes = [1, 4, 8], strides = [1, 1, 1]} : vector<4x4x8xf32> to vector<1x4x8xf32>
    %140 = vector.shape_cast %139 : vector<1x4x8xf32> to vector<4x8xf32>
    %141 = vector.extract_strided_slice %134 {offsets = [3, 0, 0], sizes = [1, 4, 8], strides = [1, 1, 1]} : vector<4x4x8xf32> to vector<1x4x8xf32>
    %142 = vector.shape_cast %141 : vector<1x4x8xf32> to vector<4x8xf32>
    %143 = arith.subf %136, %138 : vector<4x8xf32>
    %144 = math.absf %143 : vector<4x8xf32>
    %145 = vector.shape_cast %144 : vector<4x8xf32> to vector<1x4x8xf32>
    %cst_52 = arith.constant dense<0.000000e+00> : vector<1xf32>
    %146 = vector.multi_reduction <add>, %145, %cst_52 [1, 2] : vector<1x4x8xf32> to vector<1xf32>
    %147 = vector.shape_cast %146 : vector<1xf32> to vector<1x1x1xf32>
    %148 = vector.extract %147[0, 0, 0] : f32 from vector<1x1x1xf32>
    %149 = arith.subf %140, %142 : vector<4x8xf32>
    %150 = math.absf %149 : vector<4x8xf32>
    %151 = vector.shape_cast %150 : vector<4x8xf32> to vector<1x4x8xf32>
    %cst_53 = arith.constant dense<0.000000e+00> : vector<1xf32>
    %152 = vector.multi_reduction <add>, %151, %cst_53 [1, 2] : vector<1x4x8xf32> to vector<1xf32>
    %153 = vector.shape_cast %152 : vector<1xf32> to vector<1x1x1xf32>
    %154 = vector.extract %153[0, 0, 0] : f32 from vector<1x1x1xf32>
    %155 = vector.extract_strided_slice %136 {offsets = [0, 0], sizes = [1, 8], strides = [1, 1]} : vector<4x8xf32> to vector<1x8xf32>
    %156 = vector.extract_strided_slice %136 {offsets = [1, 0], sizes = [1, 8], strides = [1, 1]} : vector<4x8xf32> to vector<1x8xf32>
    %157 = vector.extract_strided_slice %136 {offsets = [2, 0], sizes = [1, 8], strides = [1, 1]} : vector<4x8xf32> to vector<1x8xf32>
    %158 = vector.extract_strided_slice %136 {offsets = [3, 0], sizes = [1, 8], strides = [1, 1]} : vector<4x8xf32> to vector<1x8xf32>
    %cst_54 = arith.constant 5.000000e-01 : f32
    %159 = vector.broadcast %cst_54 : f32 to vector<1x8xf32>
    %160 = arith.mulf %159, %157 : vector<1x8xf32>
    %161 = arith.subf %155, %160 : vector<1x8xf32>
    %cst_55 = arith.constant 5.000000e-01 : f32
    %162 = vector.broadcast %cst_55 : f32 to vector<1x8xf32>
    %163 = arith.mulf %162, %158 : vector<1x8xf32>
    %164 = arith.subf %156, %163 : vector<1x8xf32>
    %cst_56 = arith.constant 5.000000e-01 : f32
    %165 = vector.broadcast %cst_56 : f32 to vector<1x8xf32>
    %166 = arith.mulf %165, %157 : vector<1x8xf32>
    %167 = arith.addf %155, %166 : vector<1x8xf32>
    %cst_57 = arith.constant 5.000000e-01 : f32
    %168 = vector.broadcast %cst_57 : f32 to vector<1x8xf32>
    %169 = arith.mulf %168, %158 : vector<1x8xf32>
    %170 = arith.addf %156, %169 : vector<1x8xf32>
    %171 = vector.extract_strided_slice %138 {offsets = [0, 0], sizes = [1, 8], strides = [1, 1]} : vector<4x8xf32> to vector<1x8xf32>
    %172 = vector.extract_strided_slice %138 {offsets = [1, 0], sizes = [1, 8], strides = [1, 1]} : vector<4x8xf32> to vector<1x8xf32>
    %173 = vector.extract_strided_slice %138 {offsets = [2, 0], sizes = [1, 8], strides = [1, 1]} : vector<4x8xf32> to vector<1x8xf32>
    %174 = vector.extract_strided_slice %138 {offsets = [3, 0], sizes = [1, 8], strides = [1, 1]} : vector<4x8xf32> to vector<1x8xf32>
    %cst_58 = arith.constant 5.000000e-01 : f32
    %175 = vector.broadcast %cst_58 : f32 to vector<1x8xf32>
    %176 = arith.mulf %175, %173 : vector<1x8xf32>
    %177 = arith.subf %171, %176 : vector<1x8xf32>
    %cst_59 = arith.constant 5.000000e-01 : f32
    %178 = vector.broadcast %cst_59 : f32 to vector<1x8xf32>
    %179 = arith.mulf %178, %174 : vector<1x8xf32>
    %180 = arith.subf %172, %179 : vector<1x8xf32>
    %cst_60 = arith.constant 5.000000e-01 : f32
    %181 = vector.broadcast %cst_60 : f32 to vector<1x8xf32>
    %182 = arith.mulf %181, %173 : vector<1x8xf32>
    %183 = arith.addf %171, %182 : vector<1x8xf32>
    %cst_61 = arith.constant 5.000000e-01 : f32
    %184 = vector.broadcast %cst_61 : f32 to vector<1x8xf32>
    %185 = arith.mulf %184, %174 : vector<1x8xf32>
    %186 = arith.addf %172, %185 : vector<1x8xf32>
    %187 = arith.subf %167, %161 : vector<1x8xf32>
    %188 = arith.subf %170, %164 : vector<1x8xf32>
    %189 = arith.mulf %187, %188 : vector<1x8xf32>
    %190 = arith.subf %183, %177 : vector<1x8xf32>
    %191 = arith.subf %186, %180 : vector<1x8xf32>
    %192 = arith.mulf %190, %191 : vector<1x8xf32>
    %193 = arith.maximumf %161, %177 : vector<1x8xf32>
    %194 = arith.maximumf %164, %180 : vector<1x8xf32>
    %195 = arith.minimumf %167, %183 : vector<1x8xf32>
    %196 = arith.minimumf %170, %186 : vector<1x8xf32>
    %197 = arith.subf %195, %193 : vector<1x8xf32>
    %cst_62 = arith.constant 0.000000e+00 : f32
    %198 = vector.broadcast %cst_62 : f32 to vector<1x8xf32>
    %199 = arith.maximumf %197, %198 : vector<1x8xf32>
    %200 = arith.subf %196, %194 : vector<1x8xf32>
    %cst_63 = arith.constant 0.000000e+00 : f32
    %201 = vector.broadcast %cst_63 : f32 to vector<1x8xf32>
    %202 = arith.maximumf %200, %201 : vector<1x8xf32>
    %203 = arith.mulf %199, %202 : vector<1x8xf32>
    %204 = arith.addf %189, %192 : vector<1x8xf32>
    %205 = arith.subf %204, %203 : vector<1x8xf32>
    %206 = arith.divf %203, %205 : vector<1x8xf32>
    %207 = arith.minimumf %161, %177 : vector<1x8xf32>
    %208 = arith.minimumf %164, %180 : vector<1x8xf32>
    %209 = arith.maximumf %167, %183 : vector<1x8xf32>
    %210 = arith.maximumf %170, %186 : vector<1x8xf32>
    %211 = arith.subf %209, %207 : vector<1x8xf32>
    %212 = arith.subf %210, %208 : vector<1x8xf32>
    %213 = arith.mulf %211, %212 : vector<1x8xf32>
    %214 = arith.subf %213, %205 : vector<1x8xf32>
    %215 = arith.divf %214, %213 : vector<1x8xf32>
    %216 = arith.subf %206, %215 : vector<1x8xf32>
    %cst_64 = arith.constant 1.000000e+00 : f32
    %217 = vector.broadcast %cst_64 : f32 to vector<1x8xf32>
    %218 = arith.subf %217, %216 : vector<1x8xf32>
    %219 = vector.shape_cast %218 : vector<1x8xf32> to vector<1x1x8xf32>
    %cst_65 = arith.constant dense<0.000000e+00> : vector<1xf32>
    %220 = vector.multi_reduction <add>, %219, %cst_65 [1, 2] : vector<1x1x8xf32> to vector<1xf32>
    %221 = vector.shape_cast %220 : vector<1xf32> to vector<1x1x1xf32>
    %222 = vector.extract %221[0, 0, 0] : f32 from vector<1x1x1xf32>
    %223 = vector.extract_strided_slice %140 {offsets = [0, 0], sizes = [1, 8], strides = [1, 1]} : vector<4x8xf32> to vector<1x8xf32>
    %224 = vector.extract_strided_slice %140 {offsets = [1, 0], sizes = [1, 8], strides = [1, 1]} : vector<4x8xf32> to vector<1x8xf32>
    %225 = vector.extract_strided_slice %140 {offsets = [2, 0], sizes = [1, 8], strides = [1, 1]} : vector<4x8xf32> to vector<1x8xf32>
    %226 = vector.extract_strided_slice %140 {offsets = [3, 0], sizes = [1, 8], strides = [1, 1]} : vector<4x8xf32> to vector<1x8xf32>
    %cst_66 = arith.constant 5.000000e-01 : f32
    %227 = vector.broadcast %cst_66 : f32 to vector<1x8xf32>
    %228 = arith.mulf %227, %225 : vector<1x8xf32>
    %229 = arith.subf %223, %228 : vector<1x8xf32>
    %cst_67 = arith.constant 5.000000e-01 : f32
    %230 = vector.broadcast %cst_67 : f32 to vector<1x8xf32>
    %231 = arith.mulf %230, %226 : vector<1x8xf32>
    %232 = arith.subf %224, %231 : vector<1x8xf32>
    %cst_68 = arith.constant 5.000000e-01 : f32
    %233 = vector.broadcast %cst_68 : f32 to vector<1x8xf32>
    %234 = arith.mulf %233, %225 : vector<1x8xf32>
    %235 = arith.addf %223, %234 : vector<1x8xf32>
    %cst_69 = arith.constant 5.000000e-01 : f32
    %236 = vector.broadcast %cst_69 : f32 to vector<1x8xf32>
    %237 = arith.mulf %236, %226 : vector<1x8xf32>
    %238 = arith.addf %224, %237 : vector<1x8xf32>
    %239 = vector.extract_strided_slice %142 {offsets = [0, 0], sizes = [1, 8], strides = [1, 1]} : vector<4x8xf32> to vector<1x8xf32>
    %240 = vector.extract_strided_slice %142 {offsets = [1, 0], sizes = [1, 8], strides = [1, 1]} : vector<4x8xf32> to vector<1x8xf32>
    %241 = vector.extract_strided_slice %142 {offsets = [2, 0], sizes = [1, 8], strides = [1, 1]} : vector<4x8xf32> to vector<1x8xf32>
    %242 = vector.extract_strided_slice %142 {offsets = [3, 0], sizes = [1, 8], strides = [1, 1]} : vector<4x8xf32> to vector<1x8xf32>
    %cst_70 = arith.constant 5.000000e-01 : f32
    %243 = vector.broadcast %cst_70 : f32 to vector<1x8xf32>
    %244 = arith.mulf %243, %241 : vector<1x8xf32>
    %245 = arith.subf %239, %244 : vector<1x8xf32>
    %cst_71 = arith.constant 5.000000e-01 : f32
    %246 = vector.broadcast %cst_71 : f32 to vector<1x8xf32>
    %247 = arith.mulf %246, %242 : vector<1x8xf32>
    %248 = arith.subf %240, %247 : vector<1x8xf32>
    %cst_72 = arith.constant 5.000000e-01 : f32
    %249 = vector.broadcast %cst_72 : f32 to vector<1x8xf32>
    %250 = arith.mulf %249, %241 : vector<1x8xf32>
    %251 = arith.addf %239, %250 : vector<1x8xf32>
    %cst_73 = arith.constant 5.000000e-01 : f32
    %252 = vector.broadcast %cst_73 : f32 to vector<1x8xf32>
    %253 = arith.mulf %252, %242 : vector<1x8xf32>
    %254 = arith.addf %240, %253 : vector<1x8xf32>
    %255 = arith.subf %235, %229 : vector<1x8xf32>
    %256 = arith.subf %238, %232 : vector<1x8xf32>
    %257 = arith.mulf %255, %256 : vector<1x8xf32>
    %258 = arith.subf %251, %245 : vector<1x8xf32>
    %259 = arith.subf %254, %248 : vector<1x8xf32>
    %260 = arith.mulf %258, %259 : vector<1x8xf32>
    %261 = arith.maximumf %229, %245 : vector<1x8xf32>
    %262 = arith.maximumf %232, %248 : vector<1x8xf32>
    %263 = arith.minimumf %235, %251 : vector<1x8xf32>
    %264 = arith.minimumf %238, %254 : vector<1x8xf32>
    %265 = arith.subf %263, %261 : vector<1x8xf32>
    %cst_74 = arith.constant 0.000000e+00 : f32
    %266 = vector.broadcast %cst_74 : f32 to vector<1x8xf32>
    %267 = arith.maximumf %265, %266 : vector<1x8xf32>
    %268 = arith.subf %264, %262 : vector<1x8xf32>
    %cst_75 = arith.constant 0.000000e+00 : f32
    %269 = vector.broadcast %cst_75 : f32 to vector<1x8xf32>
    %270 = arith.maximumf %268, %269 : vector<1x8xf32>
    %271 = arith.mulf %267, %270 : vector<1x8xf32>
    %272 = arith.addf %257, %260 : vector<1x8xf32>
    %273 = arith.subf %272, %271 : vector<1x8xf32>
    %274 = arith.divf %271, %273 : vector<1x8xf32>
    %275 = arith.minimumf %229, %245 : vector<1x8xf32>
    %276 = arith.minimumf %232, %248 : vector<1x8xf32>
    %277 = arith.maximumf %235, %251 : vector<1x8xf32>
    %278 = arith.maximumf %238, %254 : vector<1x8xf32>
    %279 = arith.subf %277, %275 : vector<1x8xf32>
    %280 = arith.subf %278, %276 : vector<1x8xf32>
    %281 = arith.mulf %279, %280 : vector<1x8xf32>
    %282 = arith.subf %281, %273 : vector<1x8xf32>
    %283 = arith.divf %282, %281 : vector<1x8xf32>
    %284 = arith.subf %274, %283 : vector<1x8xf32>
    %cst_76 = arith.constant 1.000000e+00 : f32
    %285 = vector.broadcast %cst_76 : f32 to vector<1x8xf32>
    %286 = arith.subf %285, %284 : vector<1x8xf32>
    %287 = vector.shape_cast %286 : vector<1x8xf32> to vector<1x1x8xf32>
    %cst_77 = arith.constant dense<0.000000e+00> : vector<1xf32>
    %288 = vector.multi_reduction <add>, %287, %cst_77 [1, 2] : vector<1x1x8xf32> to vector<1xf32>
    %289 = vector.shape_cast %288 : vector<1xf32> to vector<1x1x1xf32>
    %290 = vector.extract %289[0, 0, 0] : f32 from vector<1x1x1xf32>
    %291 = tpu.iota {dimensions = array<i32: 2>} : vector<1x1x128xi32>
    %cst_78 = arith.constant 0.000000e+00 : f32
    %292 = vector.broadcast %cst_78 : f32 to vector<1x1x128xf32>
    %c0_i32 = arith.constant 0 : i32
    %293 = vector.broadcast %c0_i32 : i32 to vector<1x1x128xi32>
    %294 = arith.cmpi eq, %291, %293 : vector<1x1x128xi32>
    %295 = vector.broadcast %38 : f32 to vector<1x1x128xf32>
    %296 = arith.select %294, %295, %292 : vector<1x1x128xi1>, vector<1x1x128xf32>
    %c1_i32 = arith.constant 1 : i32
    %297 = vector.broadcast %c1_i32 : i32 to vector<1x1x128xi32>
    %298 = arith.cmpi eq, %291, %297 : vector<1x1x128xi32>
    %299 = vector.broadcast %42 : f32 to vector<1x1x128xf32>
    %300 = arith.select %298, %299, %296 : vector<1x1x128xi1>, vector<1x1x128xf32>
    %c2_i32_79 = arith.constant 2 : i32
    %301 = vector.broadcast %c2_i32_79 : i32 to vector<1x1x128xi32>
    %302 = arith.cmpi eq, %291, %301 : vector<1x1x128xi32>
    %303 = vector.broadcast %75 : f32 to vector<1x1x128xf32>
    %304 = arith.select %302, %303, %300 : vector<1x1x128xi1>, vector<1x1x128xf32>
    %c3_i32 = arith.constant 3 : i32
    %305 = vector.broadcast %c3_i32 : i32 to vector<1x1x128xi32>
    %306 = arith.cmpi eq, %291, %305 : vector<1x1x128xi32>
    %307 = vector.broadcast %79 : f32 to vector<1x1x128xf32>
    %308 = arith.select %306, %307, %304 : vector<1x1x128xi1>, vector<1x1x128xf32>
    %c4_i32_80 = arith.constant 4 : i32
    %309 = vector.broadcast %c4_i32_80 : i32 to vector<1x1x128xi32>
    %310 = arith.cmpi eq, %291, %309 : vector<1x1x128xi32>
    %311 = vector.broadcast %112 : f32 to vector<1x1x128xf32>
    %312 = arith.select %310, %311, %308 : vector<1x1x128xi1>, vector<1x1x128xf32>
    %c5_i32 = arith.constant 5 : i32
    %313 = vector.broadcast %c5_i32 : i32 to vector<1x1x128xi32>
    %314 = arith.cmpi eq, %291, %313 : vector<1x1x128xi32>
    %315 = vector.broadcast %116 : f32 to vector<1x1x128xf32>
    %316 = arith.select %314, %315, %312 : vector<1x1x128xi1>, vector<1x1x128xf32>
    %c6_i32_81 = arith.constant 6 : i32
    %317 = vector.broadcast %c6_i32_81 : i32 to vector<1x1x128xi32>
    %318 = arith.cmpi eq, %291, %317 : vector<1x1x128xi32>
    %319 = vector.broadcast %132 : f32 to vector<1x1x128xf32>
    %320 = arith.select %318, %319, %316 : vector<1x1x128xi1>, vector<1x1x128xf32>
    %c7_i32 = arith.constant 7 : i32
    %321 = vector.broadcast %c7_i32 : i32 to vector<1x1x128xi32>
    %322 = arith.cmpi eq, %291, %321 : vector<1x1x128xi32>
    %323 = vector.broadcast %148 : f32 to vector<1x1x128xf32>
    %324 = arith.select %322, %323, %320 : vector<1x1x128xi1>, vector<1x1x128xf32>
    %c8_i32 = arith.constant 8 : i32
    %325 = vector.broadcast %c8_i32 : i32 to vector<1x1x128xi32>
    %326 = arith.cmpi eq, %291, %325 : vector<1x1x128xi32>
    %327 = vector.broadcast %154 : f32 to vector<1x1x128xf32>
    %328 = arith.select %326, %327, %324 : vector<1x1x128xi1>, vector<1x1x128xf32>
    %c9_i32 = arith.constant 9 : i32
    %329 = vector.broadcast %c9_i32 : i32 to vector<1x1x128xi32>
    %330 = arith.cmpi eq, %291, %329 : vector<1x1x128xi32>
    %331 = vector.broadcast %222 : f32 to vector<1x1x128xf32>
    %332 = arith.select %330, %331, %328 : vector<1x1x128xi1>, vector<1x1x128xf32>
    %c10_i32 = arith.constant 10 : i32
    %333 = vector.broadcast %c10_i32 : i32 to vector<1x1x128xi32>
    %334 = arith.cmpi eq, %291, %333 : vector<1x1x128xi32>
    %335 = vector.broadcast %290 : f32 to vector<1x1x128xf32>
    %336 = arith.select %334, %335, %332 : vector<1x1x128xi1>, vector<1x1x128xf32>
    %c0_82 = arith.constant 0 : index
    %c0_83 = arith.constant 0 : index
    %c0_84 = arith.constant 0 : index
    %337 = vector.load %arg9[%c0_82, %c0_83, %c0_84] : memref<1x1x128xf32, #tpu.memory_space<vmem>>, vector<1x1x128xf32>
    tpu.vector_store %arg9[%c0_82, %c0_83, %c0_84], %336 {strides = array<i32>} : memref<1x1x128xf32, #tpu.memory_space<vmem>>, vector<1x1x128xf32>,
    return
  }
  func.func @transform_0(%arg0: i32) -> (i32, i32, i32, i32) {
    %c0_i32 = arith.constant 0 : i32
    %c0_i32_0 = arith.constant 0 : i32
    %c0_i32_1 = arith.constant 0 : i32
    %c0_i32_2 = arith.constant 0 : i32
    return %arg0, %c0_i32, %c0_i32_0, %c0_i32_1 : i32, i32, i32, i32
  }
  func.func @transform_1(%arg0: i32) -> (i32, i32, i32, i32) {
    %c0_i32 = arith.constant 0 : i32
    %c0_i32_0 = arith.constant 0 : i32
    %c0_i32_1 = arith.constant 0 : i32
    %c0_i32_2 = arith.constant 0 : i32
    return %arg0, %c0_i32, %c0_i32_0, %c0_i32_1 : i32, i32, i32, i32
  }
  func.func @transform_2(%arg0: i32) -> (i32, i32, i32, i32) {
    %c0_i32 = arith.constant 0 : i32
    %c0_i32_0 = arith.constant 0 : i32
    %c0_i32_1 = arith.constant 0 : i32
    %c0_i32_2 = arith.constant 0 : i32
    return %arg0, %c0_i32, %c0_i32_0, %c0_i32_1 : i32, i32, i32, i32
  }
  func.func @transform_3(%arg0: i32) -> (i32, i32, i32) {
    %c0_i32 = arith.constant 0 : i32
    %c0_i32_0 = arith.constant 0 : i32
    %c0_i32_1 = arith.constant 0 : i32
    return %arg0, %c0_i32, %c0_i32_0 : i32, i32, i32
  }
  func.func @transform_4(%arg0: i32) -> (i32, i32, i32) {
    %c0_i32 = arith.constant 0 : i32
    %c0_i32_0 = arith.constant 0 : i32
    %c0_i32_1 = arith.constant 0 : i32
    return %arg0, %c0_i32, %c0_i32_0 : i32, i32, i32
  }
  func.func @transform_5(%arg0: i32) -> (i32, i32, i32) {
    %c0_i32 = arith.constant 0 : i32
    %c0_i32_0 = arith.constant 0 : i32
    %c0_i32_1 = arith.constant 0 : i32
    return %arg0, %c0_i32, %c0_i32_0 : i32, i32, i32
  }
  func.func @transform_6(%arg0: i32) -> (i32, i32) {
    %c0_i32 = arith.constant 0 : i32
    %c0_i32_0 = arith.constant 0 : i32
    %c0_i32_1 = arith.constant 0 : i32
    return %c0_i32, %c0_i32_0 : i32, i32
  }
  func.func @transform_7(%arg0: i32) -> (i32, i32, i32, i32) {
    %c0_i32 = arith.constant 0 : i32
    %c0_i32_0 = arith.constant 0 : i32
    %c0_i32_1 = arith.constant 0 : i32
    %c0_i32_2 = arith.constant 0 : i32
    return %arg0, %c0_i32, %c0_i32_0, %c0_i32_1 : i32, i32, i32, i32
  }
  func.func @transform_8(%arg0: i32) -> (i32, i32, i32) {
    %c0_i32 = arith.constant 0 : i32
    %c0_i32_0 = arith.constant 0 : i32
    %c0_i32_1 = arith.constant 0 : i32
    return %arg0, %c0_i32, %c0_i32_0 : i32, i32, i32
  }
}

</mosaic_0001>

<bundles_post_ra>
// kernel: _fused_loss_sums.1
= control target key start
LH: loop header
LB: loop body
LE: loop exit
PB: predicated region body
PF: predicated region fallthrough
CT: control target
= control target key end

     0   :  { %s1234_s27 = smov 0   ;;  %s1485_s0 = inlined_call_operand.vmem [shape: f32[3,2,8,3], index: 0, kind: input, shape index: {}]   ;;  %s1486_s1 = inlined_call_operand.vmem [shape: f32[3,2,8,5], index: 1, kind: input, shape index: {}]   ;;  %s1487_s2 = inlined_call_operand.vmem [shape: f32[3,2,8,7], index: 2, kind: input, shape index: {}]   ;;  %s1488_s3 = inlined_call_operand.vmem [shape: s32[3,2,8], index: 3, kind: input, shape index: {}]   ;;  %s1489_s4 = inlined_call_operand.vmem [shape: s32[3,2,8], index: 4, kind: input, shape index: {}]   ;;  %s1490_s5 = inlined_call_operand.vmem [shape: s32[3,2,8], index: 5, kind: input, shape index: {}]   ;;  %s1491_s6 = inlined_call_operand.vmem [shape: f32[2,1], index: 6, kind: input, shape index: {}]   ;;  %s1492_s7 = inlined_call_operand.vmem [shape: f32[3,4,4,8], index: 7, kind: input, shape index: {}]   ;;  %s1493_s8 = inlined_call_operand.vmem [shape: f32[3,1,128], index: 8, kind: output, shape index: {}]  }
   0x1 LB: > { %s1073_s28 = sadd.s32 4294967295, %s1184_s27   ;;  %p1077_p0 = scmp.ge.s32.totalorder %s1184_s27, 1  ;;  %s1184_s27 = sphi %s1234_s27, %s18_s27  }
   0x2   : > { %p319_p1 = scmp.lt.s32.totalorder %s1184_s27, 4 }
   0x4   : > { %p320_p2 = pnand %p1077_p0, %p319_p1 }
   0x5   : > { %p378_p3 = scmp.lt.s32.totalorder (!%p320_p2), %s1073_s28, 2 }
   0x6   : > { %323 = sbr.rel (%p320_p2) target bundleno = 669 (0x29d), region = 52 }
   0xb   : > { %v447_v0 = vlaneseq  ;;  %s1495_s28 = smov (!%p378_p3, %s1073_s28), 2  ;;  %vm511_vm0 = vcmask 39936   ;;  %vm420_vm1 = vcmask 23552   ;;  %vm598_vm2 = vcmask 56320  }
   0xc   : > { %s1246_s29 = sshll.u32 %s1495_s28, 4  ;;  %vm684_vm3 = vcmask 48128   ;;  %s1287_s17 = sshll.u32 %s1495_s28, 1  ;;  %v1186_v55 = vmov 6   ;;  %v1187_v56 = vmov 0.0   ;;  %vm485_vm11 = vcmask 1041409  }
   0xd   : > { %v451_v1 = vshrl.u32 %v447_v0, 7  ;;  %s387_s10 = scalar_lea.vmem %s1486_s1, %s1246_s29  ;;  %s382_s13 = scalar_lea.vmem %s1485_s0, %s1246_s29  ;;  %vm489_vm12 = vcmask 58368  }
   0xe   : > { %v1256_v2 = vld [vmem:[%s387_s10] sm:$0xff]  ;;  %s392_s16 = scalar_lea.vmem %s1487_s2, %s1246_s29  ;;  %v1272_v8 = vld [vmem:[%s387_s10 + $0x8] sm:$0xff]  ;;  %s396_s20 = scalar_lea.vmem %s1488_s3, %s1287_s17 }
   0xf   : > { %1136 = vset.pattern.permute.xlu2 %v451_v1  ;;  %1138 = vset.pattern.permute.xlu1 %v451_v1  ;;  %v1258_v3 = vld [vmem:[%s382_s13] sm:$0xff]  ;;  %v512_v4 = vsel %vm511_vm0, %v1256_v2, -inf  ;;  %v1274_v9 = vld [vmem:[%s382_s13 + $0x8] sm:$0xff]  ;;  %v515_v11 = vsel %vm511_vm0, %v1272_v8, -inf  ;;  %s400_s23 = scalar_lea.vmem %s1489_s4, %s1287_s17  ;;  %s404_s26 = scalar_lea.vmem %s1490_s5, %s1287_s17 }
  0x10   : > { %1137 = vset.pattern.permute.xlu0 %v451_v1  ;;  %v421_v5 = vsel %vm420_vm1, %v1258_v3, -inf  ;;  %v1268_v6 = vld [vmem:[%s392_s16] sm:$0xff]  ;;  %513 = vmax.xlane.f32.xlu1 %v512_v4  ;;  %v1276_v10 = vld [vmem:[%s392_s16 + $0x8] sm:$0xff]  ;;  %v424_v12 = vsel %vm420_vm1, %v1274_v9, -inf  ;;  %v1348_v4 = vand.u32 127, %v447_v0  ;;  %s1397_s10 = scalar_lea.vmem %s1492_s7, %s1246_s29  ;;  %s412_s24 = scalar_lea.vmem %s1493_s8, %s1495_s28 }
  0x11   : > { %422 = vmax.xlane.f32.xlu0 %v421_v5  ;;  %v599_v7 = vsel %vm598_vm2, %v1268_v6, -inf  ;;  %v602_v13 = vsel %vm598_vm2, %v1276_v10, -inf  ;;  %v688_v14 = vsel %vm684_vm3, %v1276_v10, -inf  ;;  %v685_v15 = vsel %vm684_vm3, %v1268_v6, -inf  ;;  %v1293_v16 = vld [vmem:[%s396_s20] sm:$0x3] }
  0x12   : > { %600 = vmax.xlane.f32.xlu2 %v599_v7  ;;  %v449_v17 = vperm.slane %v1293_v16, 0  ;;  %v1325_v43 = vld [vmem:[%s400_s23] sm:$0x3]  ;;  %v456_v46 = vperm.slane %v1293_v16, 1 }
  0x13   : > { %v538_v44 = vperm.slane %v1325_v43, 0  ;;  %v545_v45 = vperm.slane %v1325_v43, 1  ;;  %v1334_v47 = vld [vmem:[%s404_s26] sm:$0x3]  ;;  %vm568_vm15 = vcmp.eq.s32.totalorder %v1325_v43, 4 }
  0x14   : > { %v625_v48 = vperm.slane %v1334_v47, 0  ;;  %v632_v61 = vperm.slane %v1334_v47, 1  ;;  %vm655_vm14 = vcmp.eq.s32.totalorder %v1334_v47, 6  ;;  %v727_v43 = vld [vmem:[%s1397_s10 + $0x4] sm:$0xf] }
  0x18   : > { %516 = vmax.xlane.f32.xlu1 %v515_v11 }
  0x19   : > { %425 = vmax.xlane.f32.xlu0 %v424_v12 }
  0x1a   : > { %603 = vmax.xlane.f32.xlu2 %v602_v13 }
  0x20   : > { %689 = vmax.xlane.f32.xlu1 %v688_v14 }
  0x21   : > { %686 = vmax.xlane.f32.xlu0 %v685_v15 }
  0x32   : > { %454 = vperm.xlu2 %1136, %v449_v17  }
  0x83   : > { %v1296_v18 = vpop.xlane.xlu1 %513 }
  0x84   : > { %v1298_v19 = vpop.xlane.xlu0 %422  ;;  %v518_v20 = vsub.f32 %v1256_v2, %v1296_v18 }
  0x85   : > { %v427_v21 = vsub.f32 %v1258_v3, %v1298_v19  ;;  %v1304_v24 = vpop.xlane.xlu2 %600 }
  0x86   : > { %v520_v22 = vmul.f32 1.442695, %v518_v20  ;;  %v605_v29 = vsub.f32 %v1268_v6, %v1304_v24 }
  0x87   : > { %v429_v23 = vmul.f32 1.442695, %v427_v21 }
  0x88   : > { %1146 = vpow2.f32 %v520_v22  ;;  %v607_v36 = vmul.f32 1.442695, %v605_v29 }
  0x89   : > { %1148 = vpow2.f32 %v429_v23 }
  0x8b   : > { %v1306_v25 = vpop.xlane.xlu1 %516 }
  0x8c   : > { %v1308_v26 = vpop.xlane.xlu0 %425  ;;  %v519_v27 = vsub.f32 %v1272_v8, %v1306_v25 }
  0x8d   : > { %v428_v28 = vsub.f32 %v1274_v9, %v1308_v26  ;;  %v1337_v49 = vpop.xlane.xlu2 %603 }
  0x8e   : > { %v1147_v30 = vpop.eup %1146  ;;  %v522_v31 = vmul.f32 1.442695, %v519_v27  ;;  %v606_v50 = vsub.f32 %v1276_v10, %v1337_v49 }
  0x8f   : > { %v431_v32 = vmul.f32 1.442695, %v428_v28  ;;  %v1149_v33 = vpop.eup %1148  ;;  %v524_v34 = vsel %vm511_vm0, %v1147_v30, 0.0 }
  0x90   : > { %1150 = vpow2.f32 %v522_v31  ;;  %525 = vadd.xlane.f32.xlu1 %v524_v34  ;;  %v433_v35 = vsel %vm420_vm1, %v1149_v33, 0.0  ;;  %v609_v51 = vmul.f32 1.442695, %v606_v50 }
  0x91   : > { %1152 = vpow2.f32 %v431_v32  ;;  %434 = vadd.xlane.f32.xlu2 %v433_v35 }
  0x92   : > { %1154 = vpow2.f32 %v607_v36 }
  0x93   : > { %1156 = vpow2.f32 %v609_v51  ;;  %v690_v52 = vpop.xlane.xlu1 %689 }
  0x94   : > { %v687_v53 = vpop.xlane.xlu0 %686  ;;  %vm692_vm4 = vcmp.ge.f32.partialorder %v690_v52, %v1276_v10 }
  0x95   : > { %vm691_vm5 = vcmp.ge.f32.partialorder %v687_v53, %v1268_v6  ;;  %v1096_v57 = vsel %vm692_vm4, 1.0, %v1187_v56  ;;  %v455_v62 = vpop.permute.xlu2 %454 }
  0x96   : > { %v1151_v37 = vpop.eup %1150  ;;  %v1095_v58 = vsel %vm691_vm5, 1.0, %v1187_v56  ;;  %vm463_vm6 = vcmp.eq.s32.totalorder %v1348_v4, %v455_v62 }
  0x97   : > { %v1153_v38 = vpop.eup %1152  ;;  %v527_v39 = vsel %vm511_vm0, %v1151_v37, 0.0  ;;  %v1140_v59 = vpack.i.bf16 %v1096_v57, %v1095_v58  ;;  %v1089_v17 = vsel %vm463_vm6, 1.0, %v1187_v56 }
  0x98   : > { %v436_v40 = vsel %vm420_vm1, %v1153_v38, 0.0  ;;  %v1155_v41 = vpop.eup %1154 }
  0x99   : > { %528 = vadd.xlane.f32.xlu2 %v527_v39  ;;  %437 = vadd.xlane.f32.xlu0 %v436_v40  ;;  %v611_v42 = vsel %vm598_vm2, %v1155_v41, 0.0  ;;  %v1157_v54 = vpop.eup %1156 }
  0x9a   : > { %v614_v60 = vsel %vm598_vm2, %v1157_v54, 0.0 }
  0xa1   : > { %612 = vadd.xlane.f32.xlu0 %v611_v42 }
  0xa9   : > { %543 = vperm.xlu1 %1138, %v538_v44  }
  0xb1   : > { %550 = vperm.xlu2 %1136, %v545_v45  }
  0xb5   : > { %461 = vperm.xlu0 %1137, %v456_v46  }
  0xb9   : > { %630 = vperm.xlu2 %1136, %v625_v48  }
  0xbd   : > { %1145 = vset.pattern.permute.xlu0 %v1186_v55 }
  0xc1   : > { %1139 = vset.pattern.permute.xlu2 %v1186_v55 }
  0xc2   : > { %1141 = vperm.xlu2 %1139, %v1140_v59  }
  0xd3   : > { %615 = vadd.xlane.f32.xlu1 %v614_v60 }
  0xec   : > { %637 = vperm.xlu1 %1138, %v632_v61  }
 0x103   : > { %v526_v1 = vpop.xlane.xlu1 %525 }
 0x104   : > { %v435_v63 = vpop.xlane.xlu2 %434 }
 0x105   : > { %1158 = vlog2.f32 %v435_v63 }
 0x106   : > { %1160 = vlog2.f32 %v526_v1 }
 0x10b   : > { %v1159_v5 = vpop.eup %1158 }
 0x10c   : > { %v440_v7 = vmul.f32 0.6931472, %v1159_v5  ;;  %v529_v11 = vpop.xlane.xlu2 %528  ;;  %v438_v12 = vpop.xlane.xlu0 %437 }
 0x10d   : > { %1162 = vlog2.f32 %v529_v11  ;;  %v1161_v15 = vpop.eup %1160 }
 0x10e   : > { %v443_v13 = vadd.f32 %v440_v7, %v1298_v19  ;;  %v531_v22 = vmul.f32 0.6931472, %v1161_v15  ;;  %v1188_v7 = vmov 1.0  }
 0x10f   : > { %v1385_v11 = vsel %vm655_vm14, 0.1, %v1188_v7 }
 0x110   : > { %v445_v14 = vsub.f32 %v1258_v3, %v443_v13  ;;  %v534_v3 = vadd.f32 %v531_v22, %v1296_v18 }
 0x112   : > { %v469_v20 = vmul.f32 %v1089_v17, %v445_v14  ;;  %v536_v35 = vsub.f32 %v1256_v2, %v534_v3  ;;  %v726_v14 = vld [vmem:[%s1397_s10] sm:$0xf] }
 0x113   : > { %v1163_v21 = vpop.eup %1162  ;;  %v730_v15 = vsub.f32 %v726_v14, %v727_v43  ;;  %v755_v17 = vmul.f32 0.5, %v726_v14 }
 0x114   : > { %v533_v0 = vmul.f32 0.6931472, %v1163_v21  ;;  %v551_v23 = vpop.permute.xlu2 %550  ;;  %v613_v27 = vpop.xlane.xlu0 %612  ;;  %v471_v28 = vsel %vm420_vm1, %v469_v20, 0.0  ;;  %v761_v20 = vmul.f32 0.5, %v727_v43 }
 0x115   : > { %1164 = vlog2.f32 %v613_v27  ;;  %vm553_vm7 = vcmp.eq.s32.totalorder %v1348_v4, %v551_v23  ;;  %v731_v21 = vand.u32 2147483647, %v730_v15 }
 0x116   : > { %v535_v29 = vadd.f32 %v533_v0, %v1306_v25  ;;  %472 = vadd.xlane.f32.xlu1 %v471_v28  ;;  %1166 = vlog2.f32 %v438_v12  ;;  %v1092_v30 = vsel %vm553_vm7, 1.0, %v1187_v56  ;;  %v569_v12 = vsel %vm568_vm15, 0.1, %v1188_v7 }
 0x117   : > { %v763_v22 = vrot.slane %v761_v20, 2 }
 0x118   : > { %v537_v19 = vsub.f32 %v1272_v8, %v535_v29 }
 0x11a   : > { %v559_v31 = vmul.f32 %v1092_v30, %v537_v19  ;;  %v765_v19 = vsub.f32 %v727_v43, %v763_v22  ;;  %v766_v30 = vadd.f32 %v763_v22, %v727_v43 }
 0x11b   : > { %v1165_v32 = vpop.eup %1164  ;;  %v544_v33 = vpop.permute.xlu1 %543 }
 0x11c   : > { %v618_v34 = vmul.f32 0.6931472, %v1165_v32  ;;  %vm552_vm8 = vcmp.eq.s32.totalorder %v1348_v4, %v544_v33  ;;  %v1167_v36 = vpop.eup %1166  ;;  %v631_v37 = vpop.permute.xlu2 %630  ;;  %v563_v38 = vsel %vm511_vm0, %v559_v31, 0.0 }
 0x11d   : > { %v1091_v25 = vsel %vm552_vm8, 1.0, %v1187_v56  ;;  %v442_v39 = vmul.f32 0.6931472, %v1167_v36  ;;  %vm639_vm9 = vcmp.eq.s32.totalorder %v1348_v4, %v631_v37 }
 0x11e   : > { %v621_v18 = vadd.f32 %v618_v34, %v1304_v24  ;;  %564 = vadd.xlane.f32.xlu1 %v563_v38  ;;  %v558_v8 = vmul.f32 %v1091_v25, %v536_v35  ;;  %v1093_v2 = vsel %vm639_vm9, 1.0, %v1187_v56 }
 0x11f   : > { %v444_v42 = vadd.f32 %v442_v39, %v1308_v26  ;;  %v1407_v39 = vld [vmem:[%s1397_s10 + $0x8] sm:$0xf] }
 0x120   : > { %v560_v40 = vsel %vm511_vm0, %v558_v8, 0.0  ;;  %v623_v41 = vsub.f32 %v1268_v6, %v621_v18  ;;  %vm479_vm0 = vcmp.eq.s32.totalorder %v1293_v16, 2  ;;  %v757_v16 = vrot.slane %v755_v17, 2 }
 0x121   : > { %561 = vadd.xlane.f32.xlu2 %v560_v40  ;;  %v446_v46 = vsub.f32 %v1274_v9, %v444_v42  ;;  %v1410_v40 = vld [vmem:[%s1397_s10 + $0xc] sm:$0xf] }
 0x122   : > { %v645_v44 = vmul.f32 %v1093_v2, %v623_v41  ;;  %v759_v29 = vsub.f32 %v726_v14, %v757_v16  ;;  %v760_v3 = vadd.f32 %v757_v16, %v726_v14 }
 0x124   : > { %v647_v24 = vsel %vm598_vm2, %v645_v44, 0.0  ;;  %v1142_v6 = vpop.permute.xlu2 %1141  ;;  %v802_v32 = vmin.f32 %v759_v29, %v765_v19  ;;  %v803_v33 = vmax.f32 %v760_v3, %v766_v30  ;;  %v777_v41 = vmax.f32 %v759_v29, %v765_v19 }
 0x125   : > { %v1144_v52 = vunpack.i.h.bf16 %v1142_v6  ;;  %v1143_v53 = vunpack.i.l.bf16 %v1142_v6  ;;  %v778_v2 = vmin.f32 %v760_v3, %v766_v30  ;;  %v838_v44 = vmul.f32 0.5, %v1407_v39 }
 0x126   : > { %v804_v37 = vsub.f32 %v803_v33, %v802_v32 }
 0x127   : > { %v462_v45 = vpop.permute.xlu0 %461  ;;  %v706_v26 = vperm.slane %v1144_v52, %v1348_v4  ;;  %v705_v54 = vperm.slane %v1143_v53, %v1348_v4  ;;  %v840_v52 = vrot.slane %v838_v44, 2 }
 0x128   : > { %vm464_vm10 = vcmp.eq.s32.totalorder %v1348_v4, %v462_v45  ;;  %v806_v8 = vrot.slane %v804_v37, 1  ;;  %v844_v45 = vmul.f32 0.5, %v1410_v40 }
 0x129   : > { %v1090_v48 = vsel %vm464_vm10, 1.0, %v1187_v56  ;;  %648 = vadd.xlane.f32.xlu2 %v647_v24  ;;  %v707_v55 = vsel %vm485_vm11, %v706_v26, %v705_v54 }
 0x12a   : > { %v470_v50 = vmul.f32 %v1090_v48, %v446_v46  ;;  %v709_v9 = vsel %vm489_vm12, %v707_v55, 0.0  ;;  %v767_v46 = vsub.f32 %v760_v3, %v759_v29  ;;  %v772_v48 = vsub.f32 %v766_v30, %v765_v19 }
 0x12b   : > { %710 = vadd.xlane.f32.xlu1 %v709_v9  ;;  %v1415_v6 = vmul.f32 %v806_v8, %v804_v37  ;;  %v846_v53 = vrot.slane %v844_v45, 2 }
 0x12c   : > { %v474_v51 = vsel %vm420_vm1, %v470_v50, 0.0  ;;  %vm732_vm1 = vcmask 60416   ;;  %v779_v50 = vsub.f32 %v778_v2, %v777_v41  ;;  %v769_v54 = vrot.slane %v767_v46, 1 }
 0x12d   : > { %475 = vadd.xlane.f32.xlu0 %v474_v51  ;;  %v733_v23 = vsel %vm732_vm1, %v731_v21, 0.0  ;;  %v774_v55 = vrot.slane %v772_v48, 1  ;;  %v821_v44 = vand.u32 2147483648, %v1415_v6  ;;  %vm815_vm6 = vweird.f32 %v1415_v6 }
 0x12e   : > { %v780_v9 = vmax.f32 %v779_v50, 0.0  ;;  %v743_v50 = vsub.f32 %v1407_v39, %v1410_v40 }
 0x146   : > { %v616_v57 = vpop.xlane.xlu1 %615 }
 0x147   : > { %1168 = vlog2.f32 %v616_v57  ;;  %v842_v57 = vsub.f32 %v1407_v39, %v840_v52 }
 0x148   : > { %1170 = vrcp.f32 %v1415_v6 }
 0x14d   : > { %v1169_v58 = vpop.eup %1168 }
 0x14e   : > { %v620_v59 = vmul.f32 0.6931472, %v1169_v58  ;;  %v843_v58 = vadd.f32 %v840_v52, %v1407_v39 }
 0x150   : > { %v622_v60 = vadd.f32 %v620_v59, %v1337_v49  ;;  %v674_v49 = vsel %vm489_vm12, %v1385_v11, 0.0  ;;  %v848_v59 = vsub.f32 %v1410_v40, %v846_v53  ;;  %v850_v14 = vsub.f32 %v843_v58, %v842_v57 }
 0x151   : > { %675 = vadd.xlane.f32.xlu1 %v674_v49 }
 0x152   : > { %v624_v62 = vsub.f32 %v1276_v10, %v622_v60  ;;  %v587_v10 = vsel %vm489_vm12, %v569_v12, 0.0  ;;  %v849_v60 = vadd.f32 %v846_v53, %v1410_v40  ;;  %v885_v20 = vmin.f32 %v842_v57, %v848_v59 }
 0x153   : > { %588 = vadd.xlane.f32.xlu2 %v587_v10  ;;  %v852_v16 = vrot.slane %v850_v14, 1 }
 0x154   : > { %v861_v49 = vmin.f32 %v843_v58, %v849_v60  ;;  %v855_v43 = vsub.f32 %v849_v60, %v848_v59  ;;  %v886_v21 = vmax.f32 %v843_v58, %v849_v60 }
 0x156   : > { %v857_v22 = vrot.slane %v855_v43, 1 }
 0x158   : > { %v859_v29 = vmul.f32 %v857_v22, %v855_v43 }
 0x15e   : > { %v638_v61 = vpop.permute.xlu1 %637 }
 0x15f   : > { %vm640_vm13 = vcmp.eq.s32.totalorder %v1348_v4, %v638_v61 }
 0x160   : > { %v1094_v63 = vsel %vm640_vm13, 1.0, %v1187_v56  ;;  %v480_v56 = vsel %vm479_vm0, 0.1, %v1188_v7  ;;  %v860_v7 = vmax.f32 %v842_v57, %v848_v59  ;;  %v744_v57 = vand.u32 2147483647, %v743_v50 }
 0x161   : > { %v646_v1 = vmul.f32 %v1094_v63, %v624_v62  ;;  %v500_v13 = vsel %vm489_vm12, %v480_v56, 0.0  ;;  %v771_v62 = vmul.f32 %v769_v54, %v767_v46  ;;  %v776_v63 = vmul.f32 %v774_v55, %v772_v48 }
 0x162   : > { %v862_v15 = vsub.f32 %v861_v49, %v860_v7  ;;  %v819_v54 = vand.u32 2147483647, %v1415_v6  ;;  %v822_v55 = vor.u32 1.1754944e-38, %v821_v44  ;;  %v745_v60 = vsel %vm732_vm1, %v744_v57, 0.0 }
 0x163   : > { %v650_v5 = vsel %vm598_vm2, %v646_v1, 0.0  ;;  %v782_v1 = vrot.slane %v780_v9, 1  ;;  %v785_v10 = vadd.f32 %v776_v63, %v771_v62  ;;  %vm715_vm2 = vcmask 1024  }
 0x164   : > { %651 = vadd.xlane.f32.xlu0 %v650_v5  ;;  %vm820_vm10 = vcmp.eq.f32.partialorder %v819_v54, 8.507059e+37  ;;  %vm827_vm13 = vcmask 57344  }
 0x16c   : > { %501 = vadd.xlane.f32.xlu0 %v500_v13 }
 0x174   : > { %734 = vadd.xlane.f32.xlu0 %v733_v23  ;;  %v863_v23 = vmax.f32 %v862_v15, 0.0 }
 0x176   : > { %v865_v19 = vrot.slane %v863_v23, 1 }
 0x178   : > { %v1431_v33 = vmul.f32 %v865_v19, %v863_v23 }
 0x189   : > { %v473_v47 = vpop.xlane.xlu1 %472 }
 0x18a   : > { %v477_v18 = vsub.f32 0.0, %v473_v47  ;;  %v712_v47 = vld [vmem:[%s1491_s6] sm:$0x3] }
 0x18c   : > { %v483_v51 = vperm.slane %v477_v18, %v1348_v4 }
 0x191   : > { %v565_v0 = vpop.xlane.xlu1 %564 }
 0x192   : > { %v567_v27 = vsub.f32 0.0, %v565_v0 }
 0x194   : > { %v562_v28 = vpop.xlane.xlu2 %561  ;;  %v573_v34 = vperm.slane %v567_v27, %v1348_v4  ;;  %v887_v27 = vsub.f32 %v886_v21, %v885_v20 }
 0x195   : > { %v566_v31 = vsub.f32 0.0, %v562_v28  ;;  %v854_v28 = vmul.f32 %v852_v16, %v850_v14 }
 0x196   : > { %v889_v30 = vrot.slane %v887_v27, 1 }
 0x197   : > { %v572_v35 = vperm.slane %v566_v31, %v1348_v4  ;;  %v1171_v31 = vpop.eup %1170 }
 0x198   : > { %v811_v37 = vmul.f32 %v1171_v31, %v1415_v6  ;;  %vm816_vm7 = vweird.f32 %v1171_v31 }
 0x199   : > { %v574_v36 = vsel %vm485_vm11, %v573_v34, %v572_v35  ;;  %v868_v34 = vadd.f32 %v859_v29, %v854_v28  ;;  %vm817_vm9 = vmor %vm815_vm6, %vm816_vm7  ;;  %vm926_vm6 = vcmp.eq.s32.totalorder %v1348_v4, 2  ;;  %vm929_vm7 = vcmp.eq.s32.totalorder %v1348_v4, 3 }
 0x19a   : > { %v576_v25 = vmul.f32 %v574_v36, %v569_v12  ;;  %v1423_v12 = vmul.f32 %v782_v1, %v780_v9  ;;  %v1433_v36 = vmul.f32 %v889_v30, %v887_v27  ;;  %v812_v8 = vsub.f32 1.0, %v811_v37 }
 0x19c   : > { %v577_v38 = vsel %vm489_vm12, %v576_v25, 0.0  ;;  %v786_v17 = vsub.f32 %v785_v10, %v1423_v12  ;;  %v813_v2 = vmul.f32 %v1171_v31, %v812_v8  ;;  %vm898_vm0 = vweird.f32 %v1433_v36  ;;  %v649_v20 = vpop.xlane.xlu2 %648 }
 0x19d   : > { %578 = vadd.xlane.f32.xlu1 %v577_v38  ;;  %v1437_v38 = vsub.f32 %v868_v34, %v1431_v33  ;;  %v902_v15 = vand.u32 2147483647, %v1433_v36 }
 0x19e   : > { %1172 = vrcp.f32 %v786_v17  ;;  %vm792_vm3 = vweird.f32 %v786_v17  ;;  %v814_v48 = vadd.f32 %v1171_v31, %v813_v2  ;;  %v809_v52 = vsub.f32 %v1415_v6, %v786_v17 }
 0x19f   : > { %1174 = vrcp.f32 %v1433_v36  ;;  %vm875_vm14 = vweird.f32 %v1437_v38  ;;  %v881_v10 = vand.u32 2147483648, %v1437_v38  ;;  %v879_v14 = vand.u32 2147483647, %v1437_v38 }
 0x1a0   : > { %v476_v42 = vpop.xlane.xlu0 %475  ;;  %1176 = vrcp.f32 %v1437_v38  ;;  %v892_v22 = vsub.f32 %v1433_v36, %v1437_v38 }
 0x1a1   : > { %v478_v24 = vsub.f32 0.0, %v476_v42  ;;  %v798_v42 = vand.u32 2147483648, %v786_v17 }
 0x1a3   : > { %v484_v26 = vperm.slane %v478_v24, %v1348_v4  ;;  %v796_v24 = vand.u32 2147483647, %v786_v17  ;;  %v799_v46 = vor.u32 1.1754944e-38, %v798_v42 }
 0x1a4   : > { %v1173_v35 = vpop.eup %1172 }
 0x1a5   : > { %v486_v61 = vsel %vm485_vm11, %v484_v26, %v483_v51  ;;  %v788_v25 = vmul.f32 %v1173_v35, %v786_v17  ;;  %vm793_vm4 = vweird.f32 %v1173_v35  ;;  %vm797_vm8 = vcmp.eq.f32.partialorder %v796_v24, 8.507059e+37  ;;  %v1175_v9 = vpop.eup %1174  ;;  %746 = vadd.xlane.f32.xlu1 %v745_v60 }
 0x1a6   : > { %v488_v5 = vmul.f32 %v486_v61, %v480_v56  ;;  %v711_v56 = vpop.xlane.xlu1 %710  ;;  %vm794_vm5 = vmor %vm792_vm3, %vm793_vm4  ;;  %v818_v26 = vsel %vm817_vm9, %v1171_v31, %v814_v48  ;;  %v1177_v58 = vpop.eup %1176  ;;  %v894_v1 = vmul.f32 %v1175_v9, %v1433_v36  ;;  %vm899_vm1 = vweird.f32 %v1175_v9 }
 0x1a7   : > { %v713_v0 = vsub.f32 %v711_v56, %v712_v47  ;;  %v789_v18 = vsub.f32 1.0, %v788_v25  ;;  %v823_v61 = vsel %vm820_vm10, %v822_v55, %v818_v26  ;;  %v871_v63 = vmul.f32 %v1177_v58, %v1437_v38  ;;  %vm900_vm3 = vmor %vm898_vm0, %vm899_vm1 }
 0x1a8   : > { %v490_v13 = vsel %vm489_vm12, %v488_v5, 0.0  ;;  %v824_v39 = vmul.f32 %v823_v61, %v809_v52  ;;  %v895_v7 = vsub.f32 1.0, %v894_v1  ;;  %vm876_vm15 = vweird.f32 %v1177_v58 }
 0x1a9   : > { %491 = vadd.xlane.f32.xlu2 %v490_v13  ;;  %v714_v3 = vand.u32 2147483647, %v713_v0  ;;  %v790_v41 = vmul.f32 %v1173_v35, %v789_v18  ;;  %v872_v5 = vsub.f32 1.0, %v871_v63  ;;  %v904_v13 = vand.u32 2147483648, %v1433_v36 }
 0x1aa   : > { %v882_v17 = vor.u32 1.1754944e-38, %v881_v10  ;;  %vm880_vm4 = vcmp.eq.f32.partialorder %v879_v14, 8.507059e+37  ;;  %v653_v0 = vsub.f32 0.0, %v649_v20  ;;  %vm935_vm9 = vcmp.eq.s32.totalorder %v1348_v4, 5 }
 0x1ab   : > { %v716_v32 = vsel %vm715_vm2, %v714_v3, 0.0  ;;  %v791_v45 = vadd.f32 %v1173_v35, %v790_v41  ;;  %v873_v49 = vmul.f32 %v1177_v58, %v872_v5  ;;  %vm877_vm2 = vmor %vm875_vm14, %vm876_vm15  ;;  %v905_v56 = vor.u32 1.1754944e-38, %v904_v13 }
 0x1ac   : > { %v659_v30 = vperm.slane %v653_v0, %v1348_v4  ;;  %vm938_vm10 = vcmp.eq.s32.totalorder %v1348_v4, 6  ;;  %vm944_vm14 = vcmp.eq.s32.totalorder %v1348_v4, 8  ;;  %vm947_vm15 = vcmp.eq.s32.totalorder %v1348_v4, 9 }
 0x1ad   : > { %v795_v51 = vsel %vm794_vm5, %v1173_v35, %v791_v45  ;;  %v874_v47 = vadd.f32 %v1177_v58, %v873_v49  ;;  %vm903_vm5 = vcmp.eq.f32.partialorder %v902_v15, 8.507059e+37  ;;  %vm950_vm0 = vcmp.eq.s32.totalorder %v1348_v4, 10 }
 0x1ae   : > { %v800_v53 = vsel %vm797_vm8, %v799_v46, %v795_v51  ;;  %vm932_vm8 = vcmp.eq.s32.totalorder %v1348_v4, 4 }
 0x1af   : > { %v801_v59 = vmul.f32 %v800_v53, %v1423_v12  ;;  %v896_v12 = vmul.f32 %v1175_v9, %v895_v7  ;;  %v878_v21 = vsel %vm877_vm2, %v1177_v58, %v874_v47 }
 0x1b0   : > { %v883_v23 = vsel %vm880_vm4, %v882_v17, %v878_v21 }
 0x1b1   : > { %717 = vadd.xlane.f32.xlu2 %v716_v32  ;;  %v825_v40 = vsub.f32 %v801_v59, %v824_v39  ;;  %v897_v43 = vadd.f32 %v1175_v9, %v896_v12  ;;  %v884_v3 = vmul.f32 %v883_v23, %v1431_v33 }
 0x1b3   : > { %v826_v62 = vsub.f32 1.0, %v825_v40  ;;  %v901_v16 = vsel %vm900_vm3, %v1175_v9, %v897_v43 }
 0x1b4   : > { %v906_v27 = vsel %vm903_vm5, %v905_v56, %v901_v16 }
 0x1b5   : > { %v828_v6 = vsel %vm827_vm13, %v826_v62, 0.0  ;;  %v907_v19 = vmul.f32 %v906_v27, %v892_v22 }
 0x1b7   : > { %v908_v35 = vsub.f32 %v884_v3, %v907_v19 }
 0x1b9   : > { %829 = vadd.xlane.f32.xlu2 %v828_v6  ;;  %v909_v36 = vsub.f32 1.0, %v908_v35 }
 0x1bb   : > { %v910_v37 = vsel %vm827_vm13, %v909_v36, 0.0  ;;  %vm941_vm13 = vcmp.eq.s32.totalorder %v1348_v4, 7 }
 0x1c4   : > { %v676_v38 = vpop.xlane.xlu1 %675 }
 0x1c5   : > { %v677_v7 = vrot.slane %v676_v38, 4 }
 0x1c6   : > { %v589_v8 = vpop.xlane.xlu2 %588 }
 0x1c7   : > { %v590_v2 = vrot.slane %v589_v8, 4  ;;  %v678_v47 = vadd.f32 %v677_v7, %v676_v38 }
 0x1c9   : > { %v591_v45 = vadd.f32 %v590_v2, %v589_v8  ;;  %v679_v56 = vrot.slane %v678_v47, 2 }
 0x1d7   : > { %v652_v28 = vpop.xlane.xlu0 %651 }
 0x1d8   : > { %v654_v29 = vsub.f32 0.0, %v652_v28  ;;  %v680_v28 = vadd.f32 %v679_v56, %v678_v47 }
 0x1da   : > { %v660_v31 = vperm.slane %v654_v29, %v1348_v4  ;;  %v681_v35 = vrot.slane %v680_v28, 1 }
 0x1dc   : > { %v661_v32 = vsel %vm485_vm11, %v660_v31, %v659_v30  ;;  %v682_v2 = vadd.f32 %v681_v35, %v680_v28  ;;  %vm920_vm11 = vcmp.eq.s32.totalorder %v1348_v4, 0 }
 0x1dd   : > { %v663_v34 = vmul.f32 %v661_v32, %v1385_v11  ;;  %v592_v11 = vrot.slane %v591_v45, 2 }
 0x1df   : > { %v664_v25 = vsel %vm489_vm12, %v663_v34, 0.0  ;;  %v502_v18 = vpop.xlane.xlu0 %501  ;;  %v593_v26 = vadd.f32 %v592_v11, %v591_v45  ;;  %vm923_vm12 = vcmp.eq.s32.totalorder %v1348_v4, 1 }
 0x1e0   : > { %665 = vadd.xlane.f32.xlu0 %v664_v25  ;;  %v503_v41 = vrot.slane %v502_v18, 4 }
 0x1e1   : > { %v594_v58 = vrot.slane %v593_v26, 1 }
 0x1e2   : > { %v504_v44 = vadd.f32 %v503_v41, %v502_v18 }
 0x1e3   : > { %v595_v40 = vadd.f32 %v594_v58, %v593_v26 }
 0x1e4   : > { %v505_v46 = vrot.slane %v504_v44, 2 }
 0x1e6   : > { %v506_v52 = vadd.f32 %v505_v46, %v504_v44 }
 0x1e7   : > { %v735_v6 = vpop.xlane.xlu0 %734 }
 0x1e8   : > { %911 = vadd.xlane.f32.xlu0 %v910_v37  ;;  %v507_v9 = vrot.slane %v506_v52, 1  ;;  %v736_v10 = vrot.slane %v735_v6, 4 }
 0x1ea   : > { %v508_v61 = vadd.f32 %v507_v9, %v506_v52  ;;  %v737_v15 = vadd.f32 %v736_v10, %v735_v6 }
 0x1ec   : > { %v738_v0 = vrot.slane %v737_v15, 2 }
 0x1ee   : > { %v739_v31 = vadd.f32 %v738_v0, %v737_v15 }
 0x1f0   : > { %v740_v18 = vrot.slane %v739_v31, 1 }
 0x210   : > { %v579_v33 = vpop.xlane.xlu1 %578 }
 0x211   : > { %v580_v42 = vrot.slane %v579_v33, 4 }
 0x213   : > { %v581_v24 = vadd.f32 %v580_v42, %v579_v33 }
 0x215   : > { %v582_v50 = vrot.slane %v581_v24, 2 }
 0x217   : > { %v583_v55 = vadd.f32 %v582_v50, %v581_v24  ;;  %v741_v24 = vadd.f32 %v740_v18, %v739_v31 }
 0x218   : > { %v747_v1 = vpop.xlane.xlu1 %746 }
 0x219   : > { %v584_v60 = vrot.slane %v583_v55, 1  ;;  %v748_v12 = vrot.slane %v747_v1, 4 }
 0x21b   : > { %v585_v62 = vadd.f32 %v584_v60, %v583_v55  ;;  %v749_v43 = vadd.f32 %v748_v12, %v747_v1 }
 0x21c   : > { %v492_v48 = vpop.xlane.xlu2 %491 }
 0x21d   : > { %v493_v51 = vrot.slane %v492_v48, 4  ;;  %v750_v16 = vrot.slane %v749_v43, 2 }
 0x21f   : > { %v494_v53 = vadd.f32 %v493_v51, %v492_v48  ;;  %v751_v29 = vadd.f32 %v750_v16, %v749_v43 }
 0x221   : > { %v495_v54 = vrot.slane %v494_v53, 2  ;;  %v752_v38 = vrot.slane %v751_v29, 1 }
 0x223   : > { %v496_v57 = vadd.f32 %v495_v54, %v494_v53  ;;  %v753_v45 = vadd.f32 %v752_v38, %v751_v29 }
 0x224   : > { %v718_v63 = vpop.xlane.xlu2 %717 }
 0x225   : > { %v497_v59 = vrot.slane %v496_v57, 1  ;;  %v719_v49 = vrot.slane %v718_v63, 4 }
 0x227   : > { %v498_v39 = vadd.f32 %v497_v59, %v496_v57  ;;  %v720_v14 = vadd.f32 %v719_v49, %v718_v63 }
 0x229   : > { %1103 = vpush %v498_v39  ;;  %v721_v21 = vrot.slane %v720_v14, 2 }
 0x22a   : > { %1105 = vpush %v508_v61 }
 0x22b   : > { %1107 = vpush %v585_v62  ;;  %v722_v19 = vadd.f32 %v721_v21, %v720_v14 }
 0x22c   : > { %1109 = vpush %v595_v40  ;;  %v830_v5 = vpop.xlane.xlu2 %829 }
 0x22d   : > { %v831_v13 = vrot.slane %v830_v5, 4  ;;  %v723_v37 = vrot.slane %v722_v19, 1 }
 0x22f   : > { %v832_v17 = vadd.f32 %v831_v13, %v830_v5  ;;  %v724_v44 = vadd.f32 %v723_v37, %v722_v19 }
 0x231   : > { %v833_v23 = vrot.slane %v832_v17, 2 }
 0x233   : > { %v834_v30 = vadd.f32 %v833_v23, %v832_v17 }
 0x235   : > { %v835_v33 = vrot.slane %v834_v30, 1 }
 0x237   : > { %v836_v46 = vadd.f32 %v835_v33, %v834_v30 }
 0x253   : > { %v666_v20 = vpop.xlane.xlu0 %665 }
 0x254   : > { %v667_v22 = vrot.slane %v666_v20, 4 }
 0x256   : > { %v668_v27 = vadd.f32 %v667_v22, %v666_v20 }
 0x258   : > { %v669_v3 = vrot.slane %v668_v27, 2 }
 0x25a   : > { %v670_v32 = vadd.f32 %v669_v3, %v668_v27  ;;  %s1104_s12 = spop %1103 }
 0x25b   : > { %v912_v34 = vpop.xlane.xlu0 %911  ;;  %v921_v51 = vstv %s1104_s12  ;;  %s1106_s13 = spop %1105 }
 0x25c   : > { %v913_v25 = vrot.slane %v912_v34, 4  ;;  %v671_v36 = vrot.slane %v670_v32, 1  ;;  %v922_v52 = vsel %vm920_vm11, %v921_v51, 0.0  ;;  %v924_v53 = vstv %s1106_s13  ;;  %s1108_s14 = spop %1107 }
 0x25d   : > { %v925_v26 = vsel %vm923_vm12, %v924_v53, %v922_v52  ;;  %s1110_s15 = spop %1109  ;;  %v927_v54 = vstv %s1108_s14 }
 0x25e   : > { %v914_v8 = vadd.f32 %v913_v25, %v912_v34  ;;  %v672_v41 = vadd.f32 %v671_v36, %v670_v32  ;;  %v928_v55 = vsel %vm926_vm6, %v927_v54, %v925_v26  ;;  %v930_v9 = vstv %s1110_s15 }
 0x25f   : > { %v931_v57 = vsel %vm929_vm7, %v930_v9, %v928_v55 }
 0x260   : > { %v915_v42 = vrot.slane %v914_v8, 2  ;;  %1111 = vpush %v672_v41 }
 0x261   : > { %1113 = vpush %v682_v2 }
 0x262   : > { %v916_v11 = vadd.f32 %v915_v42, %v914_v8  ;;  %1115 = vpush %v724_v44 }
 0x263   : > { %1117 = vpush %v741_v24 }
 0x264   : > { %1119 = vpush %v753_v45  ;;  %v917_v48 = vrot.slane %v916_v11, 1 }
 0x265   : > { %1121 = vpush %v836_v46 }
 0x266   : > { %v918_v50 = vadd.f32 %v917_v48, %v916_v11 }
 0x268   : > { %1123 = vpush %v918_v50 }
 0x291   : > { %s1112_s16 = spop %1111 }
 0x292   : > { %v933_v58 = vstv %s1112_s16  ;;  %s1114_s17 = spop %1113 }
 0x293   : > { %v934_v59 = vsel %vm932_vm8, %v933_v58, %v931_v57  ;;  %v936_v60 = vstv %s1114_s17  ;;  %s1116_s18 = spop %1115 }
 0x294   : > { %v937_v61 = vsel %vm935_vm9, %v936_v60, %v934_v59  ;;  %v939_v39 = vstv %s1116_s18  ;;  %s1118_s19 = spop %1117 }
 0x295   : > { %v940_v40 = vsel %vm938_vm10, %v939_v39, %v937_v61  ;;  %v942_v62 = vstv %s1118_s19  ;;  %s1120_s20 = spop %1119 }
 0x296   : > { %v943_v63 = vsel %vm941_vm13, %v942_v62, %v940_v40  ;;  %v945_v1 = vstv %s1120_s20  ;;  %s1122_s21 = spop %1121 }
 0x297   : > { %v946_v6 = vsel %vm944_vm14, %v945_v1, %v943_v63  ;;  %v948_v5 = vstv %s1122_s21 }
 0x298   : > { %v949_v7 = vsel %vm947_vm15, %v948_v5, %v946_v6 }
 0x299   : > { %s1124_s25 = spop %1123 }
 0x29a   : > { %v951_v49 = vstv %s1124_s25 }
 0x29b   : > { %v952_v12 = vsel %vm950_vm0, %v951_v49, %v949_v7 }
 0x29c   : > { %953 = vst [vmem:[%s412_s24] sm:$0x1] %v952_v12 }
 0x29d PF: > { %s18_s27 = sadd.s32 1, %s1184_s27  }
 0x29e   : > { %p15_p4 = scmp.ge.s32.totalorder %s18_s27, 5  }
 0x2a0   :  { %17 = sbr.rel (!%p15_p4) target bundleno = 1 (0x1), region = 100 }

</bundles_post_ra>
